<compile_context>
chip_gen: v5e
topology: v5e:2x2
jax: 0.10.0
libtpu: 0.0.40
codegen_flags: <defaults>
</compile_context>

<pallas_src>
import functools
import math

import jax
import jax.numpy as jnp
from jax.experimental import pallas as pl
from jax.experimental.pallas import tpu as pltpu

LEAKY_SLOPE = 0.01                 # nn.LeakyReLU(0.01)
LANE_TARGET = 128                  # pack nodes*channels up to one vreg width
BLOCK_BYTE_TARGET = 256 * 1024     # per-input block byte target (f32)


# ----------------------------------------------------------------------------
# Pallas kernel: one Interactor (INN=True) step on lane-packed node blocks.
# ----------------------------------------------------------------------------
def _conv_block(x, w1, b1, w2, b2, pad):
    """One Interactor conv branch on a lane-packed block.

    x : (Nb, L, Gc)  f32  -- Gc = G*C lanes hold G nodes' channels
    w1: (K1*Gc, GO)  bf16 -- block-diagonal im2col weight of Conv1d(C->O, K1)
    b1: (1, GO)      f32
    w2: (K2*GO, Gc)  bf16 -- block-diagonal im2col weight of Conv1d(O->C, 3)
    b2: (1, Gc)      f32
    Returns tanh(conv2(leaky(conv1(reppad(x))))) as (Nb, L, Gc) f32.
    """
    Nb, L, Gc = x.shape
    K1 = w1.shape[0] // Gc
    GO = w1.shape[1]

    # ReplicationPad1d((pad, pad)) along time, in registers.
    xp = jnp.concatenate(
        [jnp.broadcast_to(x[:, 0:1, :], (Nb, pad, Gc)),
         x,
         jnp.broadcast_to(x[:, L - 1:L, :], (Nb, pad, Gc))],
        axis=1).astype(jnp.bfloat16)                   # (Nb, L + 2*pad, Gc)

    # Conv1d(C->O, K1) for all G packed nodes at once: one im2col matmul
    #   (Nb*Lo1, K1*Gc) @ (K1*Gc, GO)  -> f32 accumulation.
    # TODO(synk): cols could be built with pltpu.roll per k (XLU slot) if a
    # bundle dump shows the sublane-shifted slice/concat dominating.
    Lo1 = L + 2 * pad - K1 + 1
    cols = jnp.concatenate([xp[:, k:k + Lo1, :] for k in range(K1)], axis=2)
    h = jnp.dot(cols.reshape(Nb * Lo1, K1 * Gc), w1,
                preferred_element_type=jnp.float32).reshape(Nb, Lo1, GO) + b1

    # LeakyReLU(0.01); nn.Dropout is identity in eval mode.
    # TODO(synk): train-mode stochastic dropout not implemented (eval semantics).
    h = jnp.maximum(h, LEAKY_SLOPE * h)

    # Conv1d(O->C, kernel 3), valid, again one im2col matmul.
    K2 = w2.shape[0] // GO
    Lo2 = Lo1 - K2 + 1                                  # == L for odd K1
    hb = h.astype(jnp.bfloat16)
    cols2 = jnp.concatenate([hb[:, k:k + Lo2, :] for k in range(K2)], axis=2)
    y = jnp.dot(cols2.reshape(Nb * Lo2, K2 * GO), w2,
                preferred_element_type=jnp.float32).reshape(Nb, Lo2, Gc) + b2
    return jnp.tanh(y)


def _interactor_kernel(xe_ref, xo_ref, w1_ref, b1_ref, w2_ref, b2_ref,
                       even_out_ref, odd_out_ref, *, pad):
    xe = xe_ref[...].astype(jnp.float32)    # (Nb, L, Gc)
    xo = xo_ref[...].astype(jnp.float32)

    def branch(i, v):    # 0=phi, 1=psi, 2=U, 3=P
        return _conv_block(v, w1_ref[i], b1_ref[i], w2_ref[i], b2_ref[i], pad)

    # TODO(synk): on v6e/v7x this elementwise chain could stay in bf16; kept
    # in f32 so the same kernel is numerically safe on v5e (no bf16 VPU/EUP).
    d = xo * jnp.exp(branch(0, xe))                                     # phi
    c = xe * jnp.exp(branch(1, xo))                                     # psi
    even_out_ref[...] = (c + branch(2, d)).astype(even_out_ref.dtype)   # U
    odd_out_ref[...] = (d - branch(3, c)).astype(odd_out_ref.dtype)     # P


def _interactor_pallas(xe_p, xo_p, w1_all, b1_all, w2_all, b2_all, pad):
    """xe_p, xo_p: (Ng, L, Gc) lane-packed nodes. Returns packed even/odd."""
    Ng, L, Gc = xe_p.shape

    # Node blocking: Nb packed groups per grid step, sized from a byte budget
    # so the double-buffered working set stays well inside scoped VMEM.
    bytes_per_group = max(1, L * Gc * 4)
    Nb = max(1, min(Ng, BLOCK_BYTE_TARGET // bytes_per_group))
    n_steps = -(-Ng // Nb)
    Ng_pad = n_steps * Nb
    if Ng_pad != Ng:
        z = jnp.zeros((Ng_pad - Ng, L, Gc), xe_p.dtype)
        xe_p = jnp.concatenate([xe_p, z], axis=0)
        xo_p = jnp.concatenate([xo_p, z], axis=0)

    def _full_spec(a):
        # Grid-invariant operand (weights/biases); always block (0, 0, ...).
        # TODO(synk): could use pipeline_mode=pl.Buffered(1) to drop the
        # second buffer for these invariant operands.
        nd = a.ndim
        return pl.BlockSpec(a.shape, lambda n, nd=nd: (0,) * nd)

    node_spec = pl.BlockSpec((Nb, L, Gc), lambda n: (n, 0, 0))
    kernel = functools.partial(_interactor_kernel, pad=pad)
    even_p, odd_p = pl.pallas_call(
        kernel,
        out_shape=(jax.ShapeDtypeStruct((Ng_pad, L, Gc), xe_p.dtype),
                   jax.ShapeDtypeStruct((Ng_pad, L, Gc), xe_p.dtype)),
        grid_spec=pltpu.PrefetchScalarGridSpec(
            num_scalar_prefetch=0,
            grid=(n_steps,),
            in_specs=[node_spec, node_spec,
                      _full_spec(w1_all), _full_spec(b1_all),
                      _full_spec(w2_all), _full_spec(b2_all)],
            out_specs=[node_spec, node_spec],
        ),
        compiler_params=pltpu.CompilerParams(
            dimension_semantics=("parallel",)),
    )(xe_p, xo_p, w1_all, b1_all, w2_all, b2_all)
    return even_p[:Ng], odd_p[:Ng]


# ----------------------------------------------------------------------------
# Lane packing helpers and one-time parameter preparation.
# ----------------------------------------------------------------------------
def _pack_nodes(x, G):
    """(N, L, C) -> (ceil(N/G), L, G*C). Node g of a group occupies lanes
    [g*C, (g+1)*C). Zero-pads the node count to a multiple of G."""
    N, L, C = x.shape
    Ng = -(-N // G)
    if Ng * G != N:
        x = jnp.concatenate([x, jnp.zeros((Ng * G - N, L, C), x.dtype)], axis=0)
    x = jnp.transpose(x.reshape(Ng, G, L, C), (0, 2, 1, 3))
    return x.reshape(Ng, L, G * C)


def _unpack_nodes(xp, G, N):
    Ng, L, Gc = xp.shape
    C = Gc // G
    x = jnp.transpose(xp.reshape(Ng, L, G, C), (0, 2, 1, 3)).reshape(Ng * G, L, C)
    return x[:N]


def _block_diag_im2col(w, G):
    """(K, Cin, Cout) conv weight -> (K*G*Cin, G*Cout) lane-packed im2col
    weight: row k*G*Cin + g*Cin + ci maps to column g*Cout + co."""
    K, Cin, Cout = w.shape
    eye = jnp.eye(G, dtype=w.dtype)
    return jnp.concatenate([jnp.kron(eye, w[k]) for k in range(K)], axis=0)


def prepare_encoder_params(level_params, batch, in_planes,
                           lane_target=LANE_TARGET):
    """One-time host-side prep (hoisted out of the forward): per tree level,
    pick the lane-packing factor G and block-diagonalise / stack / bf16-cast
    the conv weights of the 4 branches (phi, psi, U, P)."""
    names = ("phi", "psi", "U", "P")
    gmax = max(1, lane_target // in_planes)
    prepared = []
    n_nodes = 1
    for params in level_params:
        N = n_nodes * batch
        G = max(1, min(N, gmax))
        K1 = params["phi"][0].shape[0]
        w1 = jnp.stack([_block_diag_im2col(params[n][0], G) for n in names]
                       ).astype(jnp.bfloat16)                    # (4, K1*G*C, G*O)
        b1 = jnp.stack([jnp.tile(params[n][1], (1, G)) for n in names])   # (4,1,G*O)
        w2 = jnp.stack([_block_diag_im2col(params[n][2], G) for n in names]
                       ).astype(jnp.bfloat16)                    # (4, K2*G*O, G*C)
        b2 = jnp.stack([jnp.tile(params[n][3], (1, G)) for n in names])   # (4,1,G*C)
        prepared.append(dict(G=G, pad=(K1 - 1) // 2 + 1,
                             w1=w1, b1=b1, w2=w2, b2=b2))
        n_nodes *= 2
    return prepared


# ----------------------------------------------------------------------------
# EncoderTree glue (level batching, interleave) in plain JAX.
# ----------------------------------------------------------------------------
def zip_up(even, odd):
    """Interleave along time: [e0, o0, e1, o1, ...] (zip_up_the_pants)."""
    B, Le, C = even.shape
    Lo = odd.shape[1]
    mlen = min(Le, Lo)
    inter = jnp.stack([even[:, :mlen], odd[:, :mlen]], axis=2).reshape(B, 2 * mlen, C)
    if Le > Lo:
        inter = jnp.concatenate([inter, even[:, -1:]], axis=1)
    return inter


def encoder_tree_forward(x, prepared):
    """x: (B, T, C). One pallas_call per tree level over all sibling nodes."""
    B, T, C = x.shape
    nodes = [x]
    for lvl in prepared:
        stacked = nodes[0] if len(nodes) == 1 else jnp.concatenate(nodes, axis=0)
        N, L, _ = stacked.shape
        # TODO(synk): odd node lengths (T not divisible by 2^num_levels) and
        # grouped Conv1d (groups > 1) are not supported.
        assert L % 2 == 0, "sequence length must be divisible by 2**num_levels"
        G = lvl["G"]
        # Even/odd split fused (by XLA) with the lane-packing transpose:
        # a single gather pass produces the (Ng, L/2, G*C) packed operands.
        xe_p = _pack_nodes(stacked[:, 0::2, :], G)
        xo_p = _pack_nodes(stacked[:, 1::2, :], G)
        even_p, odd_p = _interactor_pallas(
            xe_p, xo_p, lvl["w1"], lvl["b1"], lvl["w2"], lvl["b2"], lvl["pad"])
        even_u = _unpack_nodes(even_p, G, N)
        odd_u = _unpack_nodes(odd_p, G, N)
        # TODO(synk): the per-level slice/concat bookkeeping could become a
        # single (N, 2, L/2, C) kernel output + free reshape.
        new_nodes = []
        for i in range(len(nodes)):
            new_nodes.append(even_u[i * B:(i + 1) * B])
            new_nodes.append(odd_u[i * B:(i + 1) * B])
        nodes = new_nodes
    # Bottom-up interleave (matches the recursive zip_up_the_pants order).
    while len(nodes) > 1:
        nodes = [zip_up(nodes[2 * i], nodes[2 * i + 1])
                 for i in range(len(nodes) // 2)]
    return nodes[0]


# ----------------------------------------------------------------------------
# Pure-JAX reference (same math, HIGHEST precision) for a sanity check.
# ----------------------------------------------------------------------------
def _conv_block_ref(x, w1, b1, w2, b2):
    B, L, C = x.shape
    K1, _, O = w1.shape
    pad = (K1 - 1) // 2 + 1
    xp = jnp.concatenate(
        [jnp.repeat(x[:, :1], pad, axis=1), x, jnp.repeat(x[:, -1:], pad, axis=1)],
        axis=1)
    Lo1 = L + 2 * pad - K1 + 1
    h = jnp.zeros((B, Lo1, O), jnp.float32) + b1[0]
    for k in range(K1):
        h = h + jnp.einsum("blc,co->blo", xp[:, k:k + Lo1], w1[k],
                           precision=jax.lax.Precision.HIGHEST)
    h = jnp.where(h >= 0, h, LEAKY_SLOPE * h)
    K2 = w2.shape[0]
    Lo2 = Lo1 - K2 + 1
    y = jnp.zeros((B, Lo2, C), jnp.float32) + b2[0]
    for k in range(K2):
        y = y + jnp.einsum("blo,oc->blc", h[:, k:k + Lo2], w2[k],
                           precision=jax.lax.Precision.HIGHEST)
    return jnp.tanh(y)


def _interactor_ref(x, p):
    xe, xo = x[:, ::2, :], x[:, 1::2, :]
    d = xo * jnp.exp(_conv_block_ref(xe, *p["phi"]))
    c = xe * jnp.exp(_conv_block_ref(xo, *p["psi"]))
    even = c + _conv_block_ref(d, *p["U"])
    odd = d - _conv_block_ref(c, *p["P"])
    return even, odd


def encoder_tree_ref(x, level_params, level=0):
    if level == len(level_params):
        return x
    even_u, odd_u = _interactor_ref(x, level_params[level])
    e = encoder_tree_ref(even_u, level_params, level + 1)
    o = encoder_tree_ref(odd_u, level_params, level + 1)
    return zip_up(e, o)


# ----------------------------------------------------------------------------
# Deterministic parameter init (shapes from Interactor.__init__).
# ----------------------------------------------------------------------------
def init_conv_block(key, C, H, K):
    k1, k2, k3, k4 = jax.random.split(key, 4)
    # PyTorch layouts: conv1 (H, C, K); conv2 (C, H, 3)
    w1 = jax.random.normal(k1, (H, C, K), jnp.float32) * (1.0 / math.sqrt(C * K))
    b1 = jax.random.normal(k2, (H,), jnp.float32) * 0.1
    w2 = jax.random.normal(k3, (C, H, 3), jnp.float32) * (1.0 / math.sqrt(H * 3))
    b2 = jax.random.normal(k4, (C,), jnp.float32) * 0.1
    # stored layout: w1 -> (K, C, H), w2 -> (3, H, C), biases -> (1, *)
    return (
        jnp.transpose(w1, (2, 1, 0)),
        b1.reshape(1, H),
        jnp.transpose(w2, (2, 1, 0)),
        b2.reshape(1, C),
    )


if __name__ == "__main__":
    B, T, C = 2, 8, 4                 # batch, seq length, in_planes
    num_levels, kernel_size, hidden_size, groups, dropout = 2, 5, 1, 1, 0.5

    key = jax.random.PRNGKey(0)
    key, xkey = jax.random.split(key)
    x = jax.random.normal(xkey, (B, T, C), jnp.float32)

    level_params = []
    for _ in range(num_levels):
        p = {}
        for name in ("phi", "psi", "U", "P"):
            key, sub = jax.random.split(key)
            p[name] = init_conv_block(sub, C, int(C * hidden_size), kernel_size)
        level_params.append(p)

    # One-time parameter preparation (stack / block-diag / bf16), outside jit.
    prepared = prepare_encoder_params(level_params, B, C)

    fwd = jax.jit(lambda inp: encoder_tree_forward(inp, prepared))
    out = jax.block_until_ready(fwd(x))

    ref = encoder_tree_ref(x, level_params)
    err = float(jnp.max(jnp.abs(out - ref)))
    scale = float(jnp.max(jnp.abs(ref))) + 1.0
    # bf16 MXU operands with f32 accumulation -> combined abs/rel tolerance.
    if not (err <= 5e-2 * scale):
        raise SystemExit(f"Pallas output mismatch vs reference (err={err})")
    print("KERNEL_OK")
</pallas_src>

<mosaic_0001>
module attributes {stable_mosaic.version = 11 : i64} {
  func.func @_interactor_kernel(%arg0: i32, %arg1: memref<1x2x16xf32, #tpu.memory_space<vmem>>, %arg2: memref<1x2x16xf32, #tpu.memory_space<vmem>>, %arg3: memref<4x80x16xbf16, #tpu.memory_space<vmem>>, %arg4: memref<4x1x16xf32, #tpu.memory_space<vmem>>, %arg5: memref<4x48x16xbf16, #tpu.memory_space<vmem>>, %arg6: memref<4x1x16xf32, #tpu.memory_space<vmem>>, %arg7: memref<1x2x16xf32, #tpu.memory_space<vmem>>, %arg8: memref<1x2x16xf32, #tpu.memory_space<vmem>>) attributes {dimension_semantics = [#tpu.dimension_semantics<parallel>], iteration_bounds = array<i64: 1>, scalar_prefetch = 0 : i64, scratch_operands = 0 : i64, tpu.core_type = #tpu.core_type<tc>, window_params = [{transform_indices = @transform_0, window_bounds = array<i64: 1, 2, 16>}, {transform_indices = @transform_1, window_bounds = array<i64: 1, 2, 16>}, {pipeline_mode = #tpu.pipeline_mode<synchronous>, transform_indices = @transform_2, window_bounds = array<i64: 4, 80, 16>}, {pipeline_mode = #tpu.pipeline_mode<synchronous>, transform_indices = @transform_3, window_bounds = array<i64: 4, 1, 16>}, {pipeline_mode = #tpu.pipeline_mode<synchronous>, transform_indices = @transform_4, window_bounds = array<i64: 4, 48, 16>}, {pipeline_mode = #tpu.pipeline_mode<synchronous>, transform_indices = @transform_5, window_bounds = array<i64: 4, 1, 16>}, {transform_indices = @transform_6, window_bounds = array<i64: 1, 2, 16>}, {transform_indices = @transform_7, window_bounds = array<i64: 1, 2, 16>}]} {
    %c0 = arith.constant 0 : index
    %c0_0 = arith.constant 0 : index
    %c0_1 = arith.constant 0 : index
    %0 = vector.load %arg1[%c0, %c0_0, %c0_1] : memref<1x2x16xf32, #tpu.memory_space<vmem>>, vector<1x2x16xf32>
    %c0_2 = arith.constant 0 : index
    %c0_3 = arith.constant 0 : index
    %c0_4 = arith.constant 0 : index
    %1 = vector.load %arg2[%c0_2, %c0_3, %c0_4] : memref<1x2x16xf32, #tpu.memory_space<vmem>>, vector<1x2x16xf32>
    %c0_5 = arith.constant 0 : index
    %c0_6 = arith.constant 0 : index
    %c0_7 = arith.constant 0 : index
    %2 = vector.load %arg3[%c0_5, %c0_6, %c0_7] : memref<4x80x16xbf16, #tpu.memory_space<vmem>>, vector<1x80x16xbf16>
    %3 = vector.shape_cast %2 : vector<1x80x16xbf16> to vector<80x16xbf16>
    %c0_8 = arith.constant 0 : index
    %c0_9 = arith.constant 0 : index
    %c0_10 = arith.constant 0 : index
    %4 = vector.load %arg4[%c0_8, %c0_9, %c0_10] : memref<4x1x16xf32, #tpu.memory_space<vmem>>, vector<1x1x16xf32>
    %5 = vector.shape_cast %4 : vector<1x1x16xf32> to vector<1x16xf32>
    %c0_11 = arith.constant 0 : index
    %c0_12 = arith.constant 0 : index
    %c0_13 = arith.constant 0 : index
    %6 = vector.load %arg5[%c0_11, %c0_12, %c0_13] : memref<4x48x16xbf16, #tpu.memory_space<vmem>>, vector<1x48x16xbf16>
    %7 = vector.shape_cast %6 : vector<1x48x16xbf16> to vector<48x16xbf16>
    %c0_14 = arith.constant 0 : index
    %c0_15 = arith.constant 0 : index
    %c0_16 = arith.constant 0 : index
    %8 = vector.load %arg6[%c0_14, %c0_15, %c0_16] : memref<4x1x16xf32, #tpu.memory_space<vmem>>, vector<1x1x16xf32>
    %9 = vector.shape_cast %8 : vector<1x1x16xf32> to vector<1x16xf32>
    %10 = vector.extract_strided_slice %0 {offsets = [0, 0, 0], sizes = [1, 1, 16], strides = [1, 1, 1]} : vector<1x2x16xf32> to vector<1x1x16xf32>
    %11 = vector.shape_cast %10 : vector<1x1x16xf32> to vector<1x1x16xf32>
    %12 = vector.broadcast %11 : vector<1x1x16xf32> to vector<1x3x16xf32>
    %13 = vector.extract_strided_slice %0 {offsets = [0, 1, 0], sizes = [1, 1, 16], strides = [1, 1, 1]} : vector<1x2x16xf32> to vector<1x1x16xf32>
    %14 = vector.shape_cast %13 : vector<1x1x16xf32> to vector<1x1x16xf32>
    %15 = vector.broadcast %14 : vector<1x1x16xf32> to vector<1x3x16xf32>
    %16 = tpu.concatenate %12, %0, %15 in 1 : vector<1x3x16xf32>, vector<1x2x16xf32>, vector<1x3x16xf32> -> vector<1x8x16xf32>
    %17 = arith.truncf %16 : vector<1x8x16xf32> to vector<1x8x16xbf16>
    %18 = vector.extract_strided_slice %17 {offsets = [0, 0, 0], sizes = [1, 4, 16], strides = [1, 1, 1]} : vector<1x8x16xbf16> to vector<1x4x16xbf16>
    %19 = vector.extract_strided_slice %17 {offsets = [0, 1, 0], sizes = [1, 4, 16], strides = [1, 1, 1]} : vector<1x8x16xbf16> to vector<1x4x16xbf16>
    %20 = vector.extract_strided_slice %17 {offsets = [0, 2, 0], sizes = [1, 4, 16], strides = [1, 1, 1]} : vector<1x8x16xbf16> to vector<1x4x16xbf16>
    %21 = vector.extract_strided_slice %17 {offsets = [0, 3, 0], sizes = [1, 4, 16], strides = [1, 1, 1]} : vector<1x8x16xbf16> to vector<1x4x16xbf16>
    %22 = vector.extract_strided_slice %17 {offsets = [0, 4, 0], sizes = [1, 4, 16], strides = [1, 1, 1]} : vector<1x8x16xbf16> to vector<1x4x16xbf16>
    %23 = tpu.concatenate %18, %19, %20, %21, %22 in 2 : vector<1x4x16xbf16>, vector<1x4x16xbf16>, vector<1x4x16xbf16>, vector<1x4x16xbf16>, vector<1x4x16xbf16> -> vector<1x4x80xbf16>
    %24 = vector.shape_cast %23 : vector<1x4x80xbf16> to vector<4x80xbf16>
    %cst = arith.constant dense<0.000000e+00> : vector<4x16xf32>
    %25 = tpu.matmul %24, %3, %cst {dimension_numbers = #tpu.dot_dimension_numbers<[1], [0], [0], [1], [0, 0, 1, 1], [], []>} : vector<4x80xbf16>, vector<80x16xbf16>, vector<4x16xf32> -> vector<4x16xf32>
    %26 = vector.shape_cast %25 : vector<4x16xf32> to vector<1x4x16xf32>
    %27 = vector.shape_cast %5 : vector<1x16xf32> to vector<1x1x16xf32>
    %28 = vector.broadcast %27 : vector<1x1x16xf32> to vector<1x4x16xf32>
    %29 = arith.addf %26, %28 : vector<1x4x16xf32>
    %cst_17 = arith.constant 0.00999999977 : f32
    %30 = vector.broadcast %cst_17 : f32 to vector<1x4x16xf32>
    %31 = arith.mulf %30, %29 : vector<1x4x16xf32>
    %32 = arith.maximumf %29, %31 : vector<1x4x16xf32>
    %33 = arith.truncf %32 : vector<1x4x16xf32> to vector<1x4x16xbf16>
    %34 = vector.extract_strided_slice %33 {offsets = [0, 0, 0], sizes = [1, 2, 16], strides = [1, 1, 1]} : vector<1x4x16xbf16> to vector<1x2x16xbf16>
    %35 = vector.extract_strided_slice %33 {offsets = [0, 1, 0], sizes = [1, 2, 16], strides = [1, 1, 1]} : vector<1x4x16xbf16> to vector<1x2x16xbf16>
    %36 = vector.extract_strided_slice %33 {offsets = [0, 2, 0], sizes = [1, 2, 16], strides = [1, 1, 1]} : vector<1x4x16xbf16> to vector<1x2x16xbf16>
    %37 = tpu.concatenate %34, %35, %36 in 2 : vector<1x2x16xbf16>, vector<1x2x16xbf16>, vector<1x2x16xbf16> -> vector<1x2x48xbf16>
    %38 = vector.shape_cast %37 : vector<1x2x48xbf16> to vector<2x48xbf16>
    %cst_18 = arith.constant dense<0.000000e+00> : vector<2x16xf32>
    %39 = tpu.matmul %38, %7, %cst_18 {dimension_numbers = #tpu.dot_dimension_numbers<[1], [0], [0], [1], [0, 0, 1, 1], [], []>} : vector<2x48xbf16>, vector<48x16xbf16>, vector<2x16xf32> -> vector<2x16xf32>
    %40 = vector.shape_cast %39 : vector<2x16xf32> to vector<1x2x16xf32>
    %41 = vector.shape_cast %9 : vector<1x16xf32> to vector<1x1x16xf32>
    %42 = vector.broadcast %41 : vector<1x1x16xf32> to vector<1x2x16xf32>
    %43 = arith.addf %40, %42 : vector<1x2x16xf32>
    %44 = math.tanh %43 : vector<1x2x16xf32>
    %45 = math.exp %44 : vector<1x2x16xf32>
    %46 = arith.mulf %1, %45 : vector<1x2x16xf32>
    %c1 = arith.constant 1 : index
    %c0_19 = arith.constant 0 : index
    %c0_20 = arith.constant 0 : index
    %47 = vector.load %arg3[%c1, %c0_19, %c0_20] : memref<4x80x16xbf16, #tpu.memory_space<vmem>>, vector<1x80x16xbf16>
    %48 = vector.shape_cast %47 : vector<1x80x16xbf16> to vector<80x16xbf16>
    %c1_21 = arith.constant 1 : index
    %c0_22 = arith.constant 0 : index
    %c0_23 = arith.constant 0 : index
    %49 = vector.load %arg4[%c1_21, %c0_22, %c0_23] : memref<4x1x16xf32, #tpu.memory_space<vmem>>, vector<1x1x16xf32>
    %50 = vector.shape_cast %49 : vector<1x1x16xf32> to vector<1x16xf32>
    %c1_24 = arith.constant 1 : index
    %c0_25 = arith.constant 0 : index
    %c0_26 = arith.constant 0 : index
    %51 = vector.load %arg5[%c1_24, %c0_25, %c0_26] : memref<4x48x16xbf16, #tpu.memory_space<vmem>>, vector<1x48x16xbf16>
    %52 = vector.shape_cast %51 : vector<1x48x16xbf16> to vector<48x16xbf16>
    %c1_27 = arith.constant 1 : index
    %c0_28 = arith.constant 0 : index
    %c0_29 = arith.constant 0 : index
    %53 = vector.load %arg6[%c1_27, %c0_28, %c0_29] : memref<4x1x16xf32, #tpu.memory_space<vmem>>, vector<1x1x16xf32>
    %54 = vector.shape_cast %53 : vector<1x1x16xf32> to vector<1x16xf32>
    %55 = vector.extract_strided_slice %1 {offsets = [0, 0, 0], sizes = [1, 1, 16], strides = [1, 1, 1]} : vector<1x2x16xf32> to vector<1x1x16xf32>
    %56 = vector.shape_cast %55 : vector<1x1x16xf32> to vector<1x1x16xf32>
    %57 = vector.broadcast %56 : vector<1x1x16xf32> to vector<1x3x16xf32>
    %58 = vector.extract_strided_slice %1 {offsets = [0, 1, 0], sizes = [1, 1, 16], strides = [1, 1, 1]} : vector<1x2x16xf32> to vector<1x1x16xf32>
    %59 = vector.shape_cast %58 : vector<1x1x16xf32> to vector<1x1x16xf32>
    %60 = vector.broadcast %59 : vector<1x1x16xf32> to vector<1x3x16xf32>
    %61 = tpu.concatenate %57, %1, %60 in 1 : vector<1x3x16xf32>, vector<1x2x16xf32>, vector<1x3x16xf32> -> vector<1x8x16xf32>
    %62 = arith.truncf %61 : vector<1x8x16xf32> to vector<1x8x16xbf16>
    %63 = vector.extract_strided_slice %62 {offsets = [0, 0, 0], sizes = [1, 4, 16], strides = [1, 1, 1]} : vector<1x8x16xbf16> to vector<1x4x16xbf16>
    %64 = vector.extract_strided_slice %62 {offsets = [0, 1, 0], sizes = [1, 4, 16], strides = [1, 1, 1]} : vector<1x8x16xbf16> to vector<1x4x16xbf16>
    %65 = vector.extract_strided_slice %62 {offsets = [0, 2, 0], sizes = [1, 4, 16], strides = [1, 1, 1]} : vector<1x8x16xbf16> to vector<1x4x16xbf16>
    %66 = vector.extract_strided_slice %62 {offsets = [0, 3, 0], sizes = [1, 4, 16], strides = [1, 1, 1]} : vector<1x8x16xbf16> to vector<1x4x16xbf16>
    %67 = vector.extract_strided_slice %62 {offsets = [0, 4, 0], sizes = [1, 4, 16], strides = [1, 1, 1]} : vector<1x8x16xbf16> to vector<1x4x16xbf16>
    %68 = tpu.concatenate %63, %64, %65, %66, %67 in 2 : vector<1x4x16xbf16>, vector<1x4x16xbf16>, vector<1x4x16xbf16>, vector<1x4x16xbf16>, vector<1x4x16xbf16> -> vector<1x4x80xbf16>
    %69 = vector.shape_cast %68 : vector<1x4x80xbf16> to vector<4x80xbf16>
    %cst_30 = arith.constant dense<0.000000e+00> : vector<4x16xf32>
    %70 = tpu.matmul %69, %48, %cst_30 {dimension_numbers = #tpu.dot_dimension_numbers<[1], [0], [0], [1], [0, 0, 1, 1], [], []>} : vector<4x80xbf16>, vector<80x16xbf16>, vector<4x16xf32> -> vector<4x16xf32>
    %71 = vector.shape_cast %70 : vector<4x16xf32> to vector<1x4x16xf32>
    %72 = vector.shape_cast %50 : vector<1x16xf32> to vector<1x1x16xf32>
    %73 = vector.broadcast %72 : vector<1x1x16xf32> to vector<1x4x16xf32>
    %74 = arith.addf %71, %73 : vector<1x4x16xf32>
    %cst_31 = arith.constant 0.00999999977 : f32
    %75 = vector.broadcast %cst_31 : f32 to vector<1x4x16xf32>
    %76 = arith.mulf %75, %74 : vector<1x4x16xf32>
    %77 = arith.maximumf %74, %76 : vector<1x4x16xf32>
    %78 = arith.truncf %77 : vector<1x4x16xf32> to vector<1x4x16xbf16>
    %79 = vector.extract_strided_slice %78 {offsets = [0, 0, 0], sizes = [1, 2, 16], strides = [1, 1, 1]} : vector<1x4x16xbf16> to vector<1x2x16xbf16>
    %80 = vector.extract_strided_slice %78 {offsets = [0, 1, 0], sizes = [1, 2, 16], strides = [1, 1, 1]} : vector<1x4x16xbf16> to vector<1x2x16xbf16>
    %81 = vector.extract_strided_slice %78 {offsets = [0, 2, 0], sizes = [1, 2, 16], strides = [1, 1, 1]} : vector<1x4x16xbf16> to vector<1x2x16xbf16>
    %82 = tpu.concatenate %79, %80, %81 in 2 : vector<1x2x16xbf16>, vector<1x2x16xbf16>, vector<1x2x16xbf16> -> vector<1x2x48xbf16>
    %83 = vector.shape_cast %82 : vector<1x2x48xbf16> to vector<2x48xbf16>
    %cst_32 = arith.constant dense<0.000000e+00> : vector<2x16xf32>
    %84 = tpu.matmul %83, %52, %cst_32 {dimension_numbers = #tpu.dot_dimension_numbers<[1], [0], [0], [1], [0, 0, 1, 1], [], []>} : vector<2x48xbf16>, vector<48x16xbf16>, vector<2x16xf32> -> vector<2x16xf32>
    %85 = vector.shape_cast %84 : vector<2x16xf32> to vector<1x2x16xf32>
    %86 = vector.shape_cast %54 : vector<1x16xf32> to vector<1x1x16xf32>
    %87 = vector.broadcast %86 : vector<1x1x16xf32> to vector<1x2x16xf32>
    %88 = arith.addf %85, %87 : vector<1x2x16xf32>
    %89 = math.tanh %88 : vector<1x2x16xf32>
    %90 = math.exp %89 : vector<1x2x16xf32>
    %91 = arith.mulf %0, %90 : vector<1x2x16xf32>
    %c2 = arith.constant 2 : index
    %c0_33 = arith.constant 0 : index
    %c0_34 = arith.constant 0 : index
    %92 = vector.load %arg3[%c2, %c0_33, %c0_34] : memref<4x80x16xbf16, #tpu.memory_space<vmem>>, vector<1x80x16xbf16>
    %93 = vector.shape_cast %92 : vector<1x80x16xbf16> to vector<80x16xbf16>
    %c2_35 = arith.constant 2 : index
    %c0_36 = arith.constant 0 : index
    %c0_37 = arith.constant 0 : index
    %94 = vector.load %arg4[%c2_35, %c0_36, %c0_37] : memref<4x1x16xf32, #tpu.memory_space<vmem>>, vector<1x1x16xf32>
    %95 = vector.shape_cast %94 : vector<1x1x16xf32> to vector<1x16xf32>
    %c2_38 = arith.constant 2 : index
    %c0_39 = arith.constant 0 : index
    %c0_40 = arith.constant 0 : index
    %96 = vector.load %arg5[%c2_38, %c0_39, %c0_40] : memref<4x48x16xbf16, #tpu.memory_space<vmem>>, vector<1x48x16xbf16>
    %97 = vector.shape_cast %96 : vector<1x48x16xbf16> to vector<48x16xbf16>
    %c2_41 = arith.constant 2 : index
    %c0_42 = arith.constant 0 : index
    %c0_43 = arith.constant 0 : index
    %98 = vector.load %arg6[%c2_41, %c0_42, %c0_43] : memref<4x1x16xf32, #tpu.memory_space<vmem>>, vector<1x1x16xf32>
    %99 = vector.shape_cast %98 : vector<1x1x16xf32> to vector<1x16xf32>
    %100 = vector.extract_strided_slice %46 {offsets = [0, 0, 0], sizes = [1, 1, 16], strides = [1, 1, 1]} : vector<1x2x16xf32> to vector<1x1x16xf32>
    %101 = vector.shape_cast %100 : vector<1x1x16xf32> to vector<1x1x16xf32>
    %102 = vector.broadcast %101 : vector<1x1x16xf32> to vector<1x3x16xf32>
    %103 = vector.extract_strided_slice %46 {offsets = [0, 1, 0], sizes = [1, 1, 16], strides = [1, 1, 1]} : vector<1x2x16xf32> to vector<1x1x16xf32>
    %104 = vector.shape_cast %103 : vector<1x1x16xf32> to vector<1x1x16xf32>
    %105 = vector.broadcast %104 : vector<1x1x16xf32> to vector<1x3x16xf32>
    %106 = tpu.concatenate %102, %46, %105 in 1 : vector<1x3x16xf32>, vector<1x2x16xf32>, vector<1x3x16xf32> -> vector<1x8x16xf32>
    %107 = arith.truncf %106 : vector<1x8x16xf32> to vector<1x8x16xbf16>
    %108 = vector.extract_strided_slice %107 {offsets = [0, 0, 0], sizes = [1, 4, 16], strides = [1, 1, 1]} : vector<1x8x16xbf16> to vector<1x4x16xbf16>
    %109 = vector.extract_strided_slice %107 {offsets = [0, 1, 0], sizes = [1, 4, 16], strides = [1, 1, 1]} : vector<1x8x16xbf16> to vector<1x4x16xbf16>
    %110 = vector.extract_strided_slice %107 {offsets = [0, 2, 0], sizes = [1, 4, 16], strides = [1, 1, 1]} : vector<1x8x16xbf16> to vector<1x4x16xbf16>
    %111 = vector.extract_strided_slice %107 {offsets = [0, 3, 0], sizes = [1, 4, 16], strides = [1, 1, 1]} : vector<1x8x16xbf16> to vector<1x4x16xbf16>
    %112 = vector.extract_strided_slice %107 {offsets = [0, 4, 0], sizes = [1, 4, 16], strides = [1, 1, 1]} : vector<1x8x16xbf16> to vector<1x4x16xbf16>
    %113 = tpu.concatenate %108, %109, %110, %111, %112 in 2 : vector<1x4x16xbf16>, vector<1x4x16xbf16>, vector<1x4x16xbf16>, vector<1x4x16xbf16>, vector<1x4x16xbf16> -> vector<1x4x80xbf16>
    %114 = vector.shape_cast %113 : vector<1x4x80xbf16> to vector<4x80xbf16>
    %cst_44 = arith.constant dense<0.000000e+00> : vector<4x16xf32>
    %115 = tpu.matmul %114, %93, %cst_44 {dimension_numbers = #tpu.dot_dimension_numbers<[1], [0], [0], [1], [0, 0, 1, 1], [], []>} : vector<4x80xbf16>, vector<80x16xbf16>, vector<4x16xf32> -> vector<4x16xf32>
    %116 = vector.shape_cast %115 : vector<4x16xf32> to vector<1x4x16xf32>
    %117 = vector.shape_cast %95 : vector<1x16xf32> to vector<1x1x16xf32>
    %118 = vector.broadcast %117 : vector<1x1x16xf32> to vector<1x4x16xf32>
    %119 = arith.addf %116, %118 : vector<1x4x16xf32>
    %cst_45 = arith.constant 0.00999999977 : f32
    %120 = vector.broadcast %cst_45 : f32 to vector<1x4x16xf32>
    %121 = arith.mulf %120, %119 : vector<1x4x16xf32>
    %122 = arith.maximumf %119, %121 : vector<1x4x16xf32>
    %123 = arith.truncf %122 : vector<1x4x16xf32> to vector<1x4x16xbf16>
    %124 = vector.extract_strided_slice %123 {offsets = [0, 0, 0], sizes = [1, 2, 16], strides = [1, 1, 1]} : vector<1x4x16xbf16> to vector<1x2x16xbf16>
    %125 = vector.extract_strided_slice %123 {offsets = [0, 1, 0], sizes = [1, 2, 16], strides = [1, 1, 1]} : vector<1x4x16xbf16> to vector<1x2x16xbf16>
    %126 = vector.extract_strided_slice %123 {offsets = [0, 2, 0], sizes = [1, 2, 16], strides = [1, 1, 1]} : vector<1x4x16xbf16> to vector<1x2x16xbf16>
    %127 = tpu.concatenate %124, %125, %126 in 2 : vector<1x2x16xbf16>, vector<1x2x16xbf16>, vector<1x2x16xbf16> -> vector<1x2x48xbf16>
    %128 = vector.shape_cast %127 : vector<1x2x48xbf16> to vector<2x48xbf16>
    %cst_46 = arith.constant dense<0.000000e+00> : vector<2x16xf32>
    %129 = tpu.matmul %128, %97, %cst_46 {dimension_numbers = #tpu.dot_dimension_numbers<[1], [0], [0], [1], [0, 0, 1, 1], [], []>} : vector<2x48xbf16>, vector<48x16xbf16>, vector<2x16xf32> -> vector<2x16xf32>
    %130 = vector.shape_cast %129 : vector<2x16xf32> to vector<1x2x16xf32>
    %131 = vector.shape_cast %99 : vector<1x16xf32> to vector<1x1x16xf32>
    %132 = vector.broadcast %131 : vector<1x1x16xf32> to vector<1x2x16xf32>
    %133 = arith.addf %130, %132 : vector<1x2x16xf32>
    %134 = math.tanh %133 : vector<1x2x16xf32>
    %135 = arith.addf %91, %134 : vector<1x2x16xf32>
    %c0_47 = arith.constant 0 : index
    %c0_48 = arith.constant 0 : index
    %c0_49 = arith.constant 0 : index
    %136 = vector.load %arg7[%c0_47, %c0_48, %c0_49] : memref<1x2x16xf32, #tpu.memory_space<vmem>>, vector<1x2x16xf32>
    tpu.vector_store %arg7[%c0_47, %c0_48, %c0_49], %135 {strides = array<i32>} : memref<1x2x16xf32, #tpu.memory_space<vmem>>, vector<1x2x16xf32>,
    %c3 = arith.constant 3 : index
    %c0_50 = arith.constant 0 : index
    %c0_51 = arith.constant 0 : index
    %137 = vector.load %arg3[%c3, %c0_50, %c0_51] : memref<4x80x16xbf16, #tpu.memory_space<vmem>>, vector<1x80x16xbf16>
    %138 = vector.shape_cast %137 : vector<1x80x16xbf16> to vector<80x16xbf16>
    %c3_52 = arith.constant 3 : index
    %c0_53 = arith.constant 0 : index
    %c0_54 = arith.constant 0 : index
    %139 = vector.load %arg4[%c3_52, %c0_53, %c0_54] : memref<4x1x16xf32, #tpu.memory_space<vmem>>, vector<1x1x16xf32>
    %140 = vector.shape_cast %139 : vector<1x1x16xf32> to vector<1x16xf32>
    %c3_55 = arith.constant 3 : index
    %c0_56 = arith.constant 0 : index
    %c0_57 = arith.constant 0 : index
    %141 = vector.load %arg5[%c3_55, %c0_56, %c0_57] : memref<4x48x16xbf16, #tpu.memory_space<vmem>>, vector<1x48x16xbf16>
    %142 = vector.shape_cast %141 : vector<1x48x16xbf16> to vector<48x16xbf16>
    %c3_58 = arith.constant 3 : index
    %c0_59 = arith.constant 0 : index
    %c0_60 = arith.constant 0 : index
    %143 = vector.load %arg6[%c3_58, %c0_59, %c0_60] : memref<4x1x16xf32, #tpu.memory_space<vmem>>, vector<1x1x16xf32>
    %144 = vector.shape_cast %143 : vector<1x1x16xf32> to vector<1x16xf32>
    %145 = vector.extract_strided_slice %91 {offsets = [0, 0, 0], sizes = [1, 1, 16], strides = [1, 1, 1]} : vector<1x2x16xf32> to vector<1x1x16xf32>
    %146 = vector.shape_cast %145 : vector<1x1x16xf32> to vector<1x1x16xf32>
    %147 = vector.broadcast %146 : vector<1x1x16xf32> to vector<1x3x16xf32>
    %148 = vector.extract_strided_slice %91 {offsets = [0, 1, 0], sizes = [1, 1, 16], strides = [1, 1, 1]} : vector<1x2x16xf32> to vector<1x1x16xf32>
    %149 = vector.shape_cast %148 : vector<1x1x16xf32> to vector<1x1x16xf32>
    %150 = vector.broadcast %149 : vector<1x1x16xf32> to vector<1x3x16xf32>
    %151 = tpu.concatenate %147, %91, %150 in 1 : vector<1x3x16xf32>, vector<1x2x16xf32>, vector<1x3x16xf32> -> vector<1x8x16xf32>
    %152 = arith.truncf %151 : vector<1x8x16xf32> to vector<1x8x16xbf16>
    %153 = vector.extract_strided_slice %152 {offsets = [0, 0, 0], sizes = [1, 4, 16], strides = [1, 1, 1]} : vector<1x8x16xbf16> to vector<1x4x16xbf16>
    %154 = vector.extract_strided_slice %152 {offsets = [0, 1, 0], sizes = [1, 4, 16], strides = [1, 1, 1]} : vector<1x8x16xbf16> to vector<1x4x16xbf16>
    %155 = vector.extract_strided_slice %152 {offsets = [0, 2, 0], sizes = [1, 4, 16], strides = [1, 1, 1]} : vector<1x8x16xbf16> to vector<1x4x16xbf16>
    %156 = vector.extract_strided_slice %152 {offsets = [0, 3, 0], sizes = [1, 4, 16], strides = [1, 1, 1]} : vector<1x8x16xbf16> to vector<1x4x16xbf16>
    %157 = vector.extract_strided_slice %152 {offsets = [0, 4, 0], sizes = [1, 4, 16], strides = [1, 1, 1]} : vector<1x8x16xbf16> to vector<1x4x16xbf16>
    %158 = tpu.concatenate %153, %154, %155, %156, %157 in 2 : vector<1x4x16xbf16>, vector<1x4x16xbf16>, vector<1x4x16xbf16>, vector<1x4x16xbf16>, vector<1x4x16xbf16> -> vector<1x4x80xbf16>
    %159 = vector.shape_cast %158 : vector<1x4x80xbf16> to vector<4x80xbf16>
    %cst_61 = arith.constant dense<0.000000e+00> : vector<4x16xf32>
    %160 = tpu.matmul %159, %138, %cst_61 {dimension_numbers = #tpu.dot_dimension_numbers<[1], [0], [0], [1], [0, 0, 1, 1], [], []>} : vector<4x80xbf16>, vector<80x16xbf16>, vector<4x16xf32> -> vector<4x16xf32>
    %161 = vector.shape_cast %160 : vector<4x16xf32> to vector<1x4x16xf32>
    %162 = vector.shape_cast %140 : vector<1x16xf32> to vector<1x1x16xf32>
    %163 = vector.broadcast %162 : vector<1x1x16xf32> to vector<1x4x16xf32>
    %164 = arith.addf %161, %163 : vector<1x4x16xf32>
    %cst_62 = arith.constant 0.00999999977 : f32
    %165 = vector.broadcast %cst_62 : f32 to vector<1x4x16xf32>
    %166 = arith.mulf %165, %164 : vector<1x4x16xf32>
    %167 = arith.maximumf %164, %166 : vector<1x4x16xf32>
    %168 = arith.truncf %167 : vector<1x4x16xf32> to vector<1x4x16xbf16>
    %169 = vector.extract_strided_slice %168 {offsets = [0, 0, 0], sizes = [1, 2, 16], strides = [1, 1, 1]} : vector<1x4x16xbf16> to vector<1x2x16xbf16>
    %170 = vector.extract_strided_slice %168 {offsets = [0, 1, 0], sizes = [1, 2, 16], strides = [1, 1, 1]} : vector<1x4x16xbf16> to vector<1x2x16xbf16>
    %171 = vector.extract_strided_slice %168 {offsets = [0, 2, 0], sizes = [1, 2, 16], strides = [1, 1, 1]} : vector<1x4x16xbf16> to vector<1x2x16xbf16>
    %172 = tpu.concatenate %169, %170, %171 in 2 : vector<1x2x16xbf16>, vector<1x2x16xbf16>, vector<1x2x16xbf16> -> vector<1x2x48xbf16>
    %173 = vector.shape_cast %172 : vector<1x2x48xbf16> to vector<2x48xbf16>
    %cst_63 = arith.constant dense<0.000000e+00> : vector<2x16xf32>
    %174 = tpu.matmul %173, %142, %cst_63 {dimension_numbers = #tpu.dot_dimension_numbers<[1], [0], [0], [1], [0, 0, 1, 1], [], []>} : vector<2x48xbf16>, vector<48x16xbf16>, vector<2x16xf32> -> vector<2x16xf32>
    %175 = vector.shape_cast %174 : vector<2x16xf32> to vector<1x2x16xf32>
    %176 = vector.shape_cast %144 : vector<1x16xf32> to vector<1x1x16xf32>
    %177 = vector.broadcast %176 : vector<1x1x16xf32> to vector<1x2x16xf32>
    %178 = arith.addf %175, %177 : vector<1x2x16xf32>
    %179 = math.tanh %178 : vector<1x2x16xf32>
    %180 = arith.subf %46, %179 : vector<1x2x16xf32>
    %c0_64 = arith.constant 0 : index
    %c0_65 = arith.constant 0 : index
    %c0_66 = arith.constant 0 : index
    %181 = vector.load %arg8[%c0_64, %c0_65, %c0_66] : memref<1x2x16xf32, #tpu.memory_space<vmem>>, vector<1x2x16xf32>
    tpu.vector_store %arg8[%c0_64, %c0_65, %c0_66], %180 {strides = array<i32>} : memref<1x2x16xf32, #tpu.memory_space<vmem>>, vector<1x2x16xf32>,
    return
  }
  func.func @transform_0(%arg0: i32) -> (i32, i32, i32) {
    %c0_i32 = arith.constant 0 : i32
    %c0_i32_0 = arith.constant 0 : i32
    %c0_i32_1 = arith.constant 0 : i32
    return %arg0, %c0_i32, %c0_i32_0 : i32, i32, i32
  }
  func.func @transform_1(%arg0: i32) -> (i32, i32, i32) {
    %c0_i32 = arith.constant 0 : i32
    %c0_i32_0 = arith.constant 0 : i32
    %c0_i32_1 = arith.constant 0 : i32
    return %arg0, %c0_i32, %c0_i32_0 : i32, i32, i32
  }
  func.func @transform_2(%arg0: i32) -> (i32, i32, i32) {
    %c0_i32 = arith.constant 0 : i32
    %c0_i32_0 = arith.constant 0 : i32
    %c0_i32_1 = arith.constant 0 : i32
    %c0_i32_2 = arith.constant 0 : i32
    return %c0_i32, %c0_i32_0, %c0_i32_1 : i32, i32, i32
  }
  func.func @transform_3(%arg0: i32) -> (i32, i32, i32) {
    %c0_i32 = arith.constant 0 : i32
    %c0_i32_0 = arith.constant 0 : i32
    %c0_i32_1 = arith.constant 0 : i32
    %c0_i32_2 = arith.constant 0 : i32
    return %c0_i32, %c0_i32_0, %c0_i32_1 : i32, i32, i32
  }
  func.func @transform_4(%arg0: i32) -> (i32, i32, i32) {
    %c0_i32 = arith.constant 0 : i32
    %c0_i32_0 = arith.constant 0 : i32
    %c0_i32_1 = arith.constant 0 : i32
    %c0_i32_2 = arith.constant 0 : i32
    return %c0_i32, %c0_i32_0, %c0_i32_1 : i32, i32, i32
  }
  func.func @transform_5(%arg0: i32) -> (i32, i32, i32) {
    %c0_i32 = arith.constant 0 : i32
    %c0_i32_0 = arith.constant 0 : i32
    %c0_i32_1 = arith.constant 0 : i32
    %c0_i32_2 = arith.constant 0 : i32
    return %c0_i32, %c0_i32_0, %c0_i32_1 : i32, i32, i32
  }
  func.func @transform_6(%arg0: i32) -> (i32, i32, i32) {
    %c0_i32 = arith.constant 0 : i32
    %c0_i32_0 = arith.constant 0 : i32
    %c0_i32_1 = arith.constant 0 : i32
    return %arg0, %c0_i32, %c0_i32_0 : i32, i32, i32
  }
  func.func @transform_7(%arg0: i32) -> (i32, i32, i32) {
    %c0_i32 = arith.constant 0 : i32
    %c0_i32_0 = arith.constant 0 : i32
    %c0_i32_1 = arith.constant 0 : i32
    return %arg0, %c0_i32, %c0_i32_0 : i32, i32, i32
  }
}

module attributes {stable_mosaic.version = 11 : i64} {
  func.func @_interactor_kernel(%arg0: i32, %arg1: memref<1x4x8xf32, #tpu.memory_space<vmem>>, %arg2: memref<1x4x8xf32, #tpu.memory_space<vmem>>, %arg3: memref<4x40x8xbf16, #tpu.memory_space<vmem>>, %arg4: memref<4x1x8xf32, #tpu.memory_space<vmem>>, %arg5: memref<4x24x8xbf16, #tpu.memory_space<vmem>>, %arg6: memref<4x1x8xf32, #tpu.memory_space<vmem>>, %arg7: memref<1x4x8xf32, #tpu.memory_space<vmem>>, %arg8: memref<1x4x8xf32, #tpu.memory_space<vmem>>) attributes {dimension_semantics = [#tpu.dimension_semantics<parallel>], iteration_bounds = array<i64: 1>, scalar_prefetch = 0 : i64, scratch_operands = 0 : i64, tpu.core_type = #tpu.core_type<tc>, window_params = [{transform_indices = @transform_0, window_bounds = array<i64: 1, 4, 8>}, {transform_indices = @transform_1, window_bounds = array<i64: 1, 4, 8>}, {pipeline_mode = #tpu.pipeline_mode<synchronous>, transform_indices = @transform_2, window_bounds = array<i64: 4, 40, 8>}, {pipeline_mode = #tpu.pipeline_mode<synchronous>, transform_indices = @transform_3, window_bounds = array<i64: 4, 1, 8>}, {pipeline_mode = #tpu.pipeline_mode<synchronous>, transform_indices = @transform_4, window_bounds = array<i64: 4, 24, 8>}, {pipeline_mode = #tpu.pipeline_mode<synchronous>, transform_indices = @transform_5, window_bounds = array<i64: 4, 1, 8>}, {transform_indices = @transform_6, window_bounds = array<i64: 1, 4, 8>}, {transform_indices = @transform_7, window_bounds = array<i64: 1, 4, 8>}]} {
    %c0 = arith.constant 0 : index
    %c0_0 = arith.constant 0 : index
    %c0_1 = arith.constant 0 : index
    %0 = vector.load %arg1[%c0, %c0_0, %c0_1] : memref<1x4x8xf32, #tpu.memory_space<vmem>>, vector<1x4x8xf32>
    %c0_2 = arith.constant 0 : index
    %c0_3 = arith.constant 0 : index
    %c0_4 = arith.constant 0 : index
    %1 = vector.load %arg2[%c0_2, %c0_3, %c0_4] : memref<1x4x8xf32, #tpu.memory_space<vmem>>, vector<1x4x8xf32>
    %c0_5 = arith.constant 0 : index
    %c0_6 = arith.constant 0 : index
    %c0_7 = arith.constant 0 : index
    %2 = vector.load %arg3[%c0_5, %c0_6, %c0_7] : memref<4x40x8xbf16, #tpu.memory_space<vmem>>, vector<1x40x8xbf16>
    %3 = vector.shape_cast %2 : vector<1x40x8xbf16> to vector<40x8xbf16>
    %c0_8 = arith.constant 0 : index
    %c0_9 = arith.constant 0 : index
    %c0_10 = arith.constant 0 : index
    %4 = vector.load %arg4[%c0_8, %c0_9, %c0_10] : memref<4x1x8xf32, #tpu.memory_space<vmem>>, vector<1x1x8xf32>
    %5 = vector.shape_cast %4 : vector<1x1x8xf32> to vector<1x8xf32>
    %c0_11 = arith.constant 0 : index
    %c0_12 = arith.constant 0 : index
    %c0_13 = arith.constant 0 : index
    %6 = vector.load %arg5[%c0_11, %c0_12, %c0_13] : memref<4x24x8xbf16, #tpu.memory_space<vmem>>, vector<1x24x8xbf16>
    %7 = vector.shape_cast %6 : vector<1x24x8xbf16> to vector<24x8xbf16>
    %c0_14 = arith.constant 0 : index
    %c0_15 = arith.constant 0 : index
    %c0_16 = arith.constant 0 : index
    %8 = vector.load %arg6[%c0_14, %c0_15, %c0_16] : memref<4x1x8xf32, #tpu.memory_space<vmem>>, vector<1x1x8xf32>
    %9 = vector.shape_cast %8 : vector<1x1x8xf32> to vector<1x8xf32>
    %10 = vector.extract_strided_slice %0 {offsets = [0, 0, 0], sizes = [1, 1, 8], strides = [1, 1, 1]} : vector<1x4x8xf32> to vector<1x1x8xf32>
    %11 = vector.shape_cast %10 : vector<1x1x8xf32> to vector<1x1x8xf32>
    %12 = vector.broadcast %11 : vector<1x1x8xf32> to vector<1x3x8xf32>
    %13 = vector.extract_strided_slice %0 {offsets = [0, 3, 0], sizes = [1, 1, 8], strides = [1, 1, 1]} : vector<1x4x8xf32> to vector<1x1x8xf32>
    %14 = vector.shape_cast %13 : vector<1x1x8xf32> to vector<1x1x8xf32>
    %15 = vector.broadcast %14 : vector<1x1x8xf32> to vector<1x3x8xf32>
    %16 = tpu.concatenate %12, %0, %15 in 1 : vector<1x3x8xf32>, vector<1x4x8xf32>, vector<1x3x8xf32> -> vector<1x10x8xf32>
    %17 = arith.truncf %16 : vector<1x10x8xf32> to vector<1x10x8xbf16>
    %18 = vector.extract_strided_slice %17 {offsets = [0, 0, 0], sizes = [1, 6, 8], strides = [1, 1, 1]} : vector<1x10x8xbf16> to vector<1x6x8xbf16>
    %19 = vector.extract_strided_slice %17 {offsets = [0, 1, 0], sizes = [1, 6, 8], strides = [1, 1, 1]} : vector<1x10x8xbf16> to vector<1x6x8xbf16>
    %20 = vector.extract_strided_slice %17 {offsets = [0, 2, 0], sizes = [1, 6, 8], strides = [1, 1, 1]} : vector<1x10x8xbf16> to vector<1x6x8xbf16>
    %21 = vector.extract_strided_slice %17 {offsets = [0, 3, 0], sizes = [1, 6, 8], strides = [1, 1, 1]} : vector<1x10x8xbf16> to vector<1x6x8xbf16>
    %22 = vector.extract_strided_slice %17 {offsets = [0, 4, 0], sizes = [1, 6, 8], strides = [1, 1, 1]} : vector<1x10x8xbf16> to vector<1x6x8xbf16>
    %23 = tpu.concatenate %18, %19, %20, %21, %22 in 2 : vector<1x6x8xbf16>, vector<1x6x8xbf16>, vector<1x6x8xbf16>, vector<1x6x8xbf16>, vector<1x6x8xbf16> -> vector<1x6x40xbf16>
    %24 = vector.shape_cast %23 : vector<1x6x40xbf16> to vector<6x40xbf16>
    %cst = arith.constant dense<0.000000e+00> : vector<6x8xf32>
    %25 = tpu.matmul %24, %3, %cst {dimension_numbers = #tpu.dot_dimension_numbers<[1], [0], [0], [1], [0, 0, 1, 1], [], []>} : vector<6x40xbf16>, vector<40x8xbf16>, vector<6x8xf32> -> vector<6x8xf32>
    %26 = vector.shape_cast %25 : vector<6x8xf32> to vector<1x6x8xf32>
    %27 = vector.shape_cast %5 : vector<1x8xf32> to vector<1x1x8xf32>
    %28 = vector.broadcast %27 : vector<1x1x8xf32> to vector<1x6x8xf32>
    %29 = arith.addf %26, %28 : vector<1x6x8xf32>
    %cst_17 = arith.constant 0.00999999977 : f32
    %30 = vector.broadcast %cst_17 : f32 to vector<1x6x8xf32>
    %31 = arith.mulf %30, %29 : vector<1x6x8xf32>
    %32 = arith.maximumf %29, %31 : vector<1x6x8xf32>
    %33 = arith.truncf %32 : vector<1x6x8xf32> to vector<1x6x8xbf16>
    %34 = vector.extract_strided_slice %33 {offsets = [0, 0, 0], sizes = [1, 4, 8], strides = [1, 1, 1]} : vector<1x6x8xbf16> to vector<1x4x8xbf16>
    %35 = vector.extract_strided_slice %33 {offsets = [0, 1, 0], sizes = [1, 4, 8], strides = [1, 1, 1]} : vector<1x6x8xbf16> to vector<1x4x8xbf16>
    %36 = vector.extract_strided_slice %33 {offsets = [0, 2, 0], sizes = [1, 4, 8], strides = [1, 1, 1]} : vector<1x6x8xbf16> to vector<1x4x8xbf16>
    %37 = tpu.concatenate %34, %35, %36 in 2 : vector<1x4x8xbf16>, vector<1x4x8xbf16>, vector<1x4x8xbf16> -> vector<1x4x24xbf16>
    %38 = vector.shape_cast %37 : vector<1x4x24xbf16> to vector<4x24xbf16>
    %cst_18 = arith.constant dense<0.000000e+00> : vector<4x8xf32>
    %39 = tpu.matmul %38, %7, %cst_18 {dimension_numbers = #tpu.dot_dimension_numbers<[1], [0], [0], [1], [0, 0, 1, 1], [], []>} : vector<4x24xbf16>, vector<24x8xbf16>, vector<4x8xf32> -> vector<4x8xf32>
    %40 = vector.shape_cast %39 : vector<4x8xf32> to vector<1x4x8xf32>
    %41 = vector.shape_cast %9 : vector<1x8xf32> to vector<1x1x8xf32>
    %42 = vector.broadcast %41 : vector<1x1x8xf32> to vector<1x4x8xf32>
    %43 = arith.addf %40, %42 : vector<1x4x8xf32>
    %44 = math.tanh %43 : vector<1x4x8xf32>
    %45 = math.exp %44 : vector<1x4x8xf32>
    %46 = arith.mulf %1, %45 : vector<1x4x8xf32>
    %c1 = arith.constant 1 : index
    %c0_19 = arith.constant 0 : index
    %c0_20 = arith.constant 0 : index
    %47 = vector.load %arg3[%c1, %c0_19, %c0_20] : memref<4x40x8xbf16, #tpu.memory_space<vmem>>, vector<1x40x8xbf16>
    %48 = vector.shape_cast %47 : vector<1x40x8xbf16> to vector<40x8xbf16>
    %c1_21 = arith.constant 1 : index
    %c0_22 = arith.constant 0 : index
    %c0_23 = arith.constant 0 : index
    %49 = vector.load %arg4[%c1_21, %c0_22, %c0_23] : memref<4x1x8xf32, #tpu.memory_space<vmem>>, vector<1x1x8xf32>
    %50 = vector.shape_cast %49 : vector<1x1x8xf32> to vector<1x8xf32>
    %c1_24 = arith.constant 1 : index
    %c0_25 = arith.constant 0 : index
    %c0_26 = arith.constant 0 : index
    %51 = vector.load %arg5[%c1_24, %c0_25, %c0_26] : memref<4x24x8xbf16, #tpu.memory_space<vmem>>, vector<1x24x8xbf16>
    %52 = vector.shape_cast %51 : vector<1x24x8xbf16> to vector<24x8xbf16>
    %c1_27 = arith.constant 1 : index
    %c0_28 = arith.constant 0 : index
    %c0_29 = arith.constant 0 : index
    %53 = vector.load %arg6[%c1_27, %c0_28, %c0_29] : memref<4x1x8xf32, #tpu.memory_space<vmem>>, vector<1x1x8xf32>
    %54 = vector.shape_cast %53 : vector<1x1x8xf32> to vector<1x8xf32>
    %55 = vector.extract_strided_slice %1 {offsets = [0, 0, 0], sizes = [1, 1, 8], strides = [1, 1, 1]} : vector<1x4x8xf32> to vector<1x1x8xf32>
    %56 = vector.shape_cast %55 : vector<1x1x8xf32> to vector<1x1x8xf32>
    %57 = vector.broadcast %56 : vector<1x1x8xf32> to vector<1x3x8xf32>
    %58 = vector.extract_strided_slice %1 {offsets = [0, 3, 0], sizes = [1, 1, 8], strides = [1, 1, 1]} : vector<1x4x8xf32> to vector<1x1x8xf32>
    %59 = vector.shape_cast %58 : vector<1x1x8xf32> to vector<1x1x8xf32>
    %60 = vector.broadcast %59 : vector<1x1x8xf32> to vector<1x3x8xf32>
    %61 = tpu.concatenate %57, %1, %60 in 1 : vector<1x3x8xf32>, vector<1x4x8xf32>, vector<1x3x8xf32> -> vector<1x10x8xf32>
    %62 = arith.truncf %61 : vector<1x10x8xf32> to vector<1x10x8xbf16>
    %63 = vector.extract_strided_slice %62 {offsets = [0, 0, 0], sizes = [1, 6, 8], strides = [1, 1, 1]} : vector<1x10x8xbf16> to vector<1x6x8xbf16>
    %64 = vector.extract_strided_slice %62 {offsets = [0, 1, 0], sizes = [1, 6, 8], strides = [1, 1, 1]} : vector<1x10x8xbf16> to vector<1x6x8xbf16>
    %65 = vector.extract_strided_slice %62 {offsets = [0, 2, 0], sizes = [1, 6, 8], strides = [1, 1, 1]} : vector<1x10x8xbf16> to vector<1x6x8xbf16>
    %66 = vector.extract_strided_slice %62 {offsets = [0, 3, 0], sizes = [1, 6, 8], strides = [1, 1, 1]} : vector<1x10x8xbf16> to vector<1x6x8xbf16>
    %67 = vector.extract_strided_slice %62 {offsets = [0, 4, 0], sizes = [1, 6, 8], strides = [1, 1, 1]} : vector<1x10x8xbf16> to vector<1x6x8xbf16>
    %68 = tpu.concatenate %63, %64, %65, %66, %67 in 2 : vector<1x6x8xbf16>, vector<1x6x8xbf16>, vector<1x6x8xbf16>, vector<1x6x8xbf16>, vector<1x6x8xbf16> -> vector<1x6x40xbf16>
    %69 = vector.shape_cast %68 : vector<1x6x40xbf16> to vector<6x40xbf16>
    %cst_30 = arith.constant dense<0.000000e+00> : vector<6x8xf32>
    %70 = tpu.matmul %69, %48, %cst_30 {dimension_numbers = #tpu.dot_dimension_numbers<[1], [0], [0], [1], [0, 0, 1, 1], [], []>} : vector<6x40xbf16>, vector<40x8xbf16>, vector<6x8xf32> -> vector<6x8xf32>
    %71 = vector.shape_cast %70 : vector<6x8xf32> to vector<1x6x8xf32>
    %72 = vector.shape_cast %50 : vector<1x8xf32> to vector<1x1x8xf32>
    %73 = vector.broadcast %72 : vector<1x1x8xf32> to vector<1x6x8xf32>
    %74 = arith.addf %71, %73 : vector<1x6x8xf32>
    %cst_31 = arith.constant 0.00999999977 : f32
    %75 = vector.broadcast %cst_31 : f32 to vector<1x6x8xf32>
    %76 = arith.mulf %75, %74 : vector<1x6x8xf32>
    %77 = arith.maximumf %74, %76 : vector<1x6x8xf32>
    %78 = arith.truncf %77 : vector<1x6x8xf32> to vector<1x6x8xbf16>
    %79 = vector.extract_strided_slice %78 {offsets = [0, 0, 0], sizes = [1, 4, 8], strides = [1, 1, 1]} : vector<1x6x8xbf16> to vector<1x4x8xbf16>
    %80 = vector.extract_strided_slice %78 {offsets = [0, 1, 0], sizes = [1, 4, 8], strides = [1, 1, 1]} : vector<1x6x8xbf16> to vector<1x4x8xbf16>
    %81 = vector.extract_strided_slice %78 {offsets = [0, 2, 0], sizes = [1, 4, 8], strides = [1, 1, 1]} : vector<1x6x8xbf16> to vector<1x4x8xbf16>
    %82 = tpu.concatenate %79, %80, %81 in 2 : vector<1x4x8xbf16>, vector<1x4x8xbf16>, vector<1x4x8xbf16> -> vector<1x4x24xbf16>
    %83 = vector.shape_cast %82 : vector<1x4x24xbf16> to vector<4x24xbf16>
    %cst_32 = arith.constant dense<0.000000e+00> : vector<4x8xf32>
    %84 = tpu.matmul %83, %52, %cst_32 {dimension_numbers = #tpu.dot_dimension_numbers<[1], [0], [0], [1], [0, 0, 1, 1], [], []>} : vector<4x24xbf16>, vector<24x8xbf16>, vector<4x8xf32> -> vector<4x8xf32>
    %85 = vector.shape_cast %84 : vector<4x8xf32> to vector<1x4x8xf32>
    %86 = vector.shape_cast %54 : vector<1x8xf32> to vector<1x1x8xf32>
    %87 = vector.broadcast %86 : vector<1x1x8xf32> to vector<1x4x8xf32>
    %88 = arith.addf %85, %87 : vector<1x4x8xf32>
    %89 = math.tanh %88 : vector<1x4x8xf32>
    %90 = math.exp %89 : vector<1x4x8xf32>
    %91 = arith.mulf %0, %90 : vector<1x4x8xf32>
    %c2 = arith.constant 2 : index
    %c0_33 = arith.constant 0 : index
    %c0_34 = arith.constant 0 : index
    %92 = vector.load %arg3[%c2, %c0_33, %c0_34] : memref<4x40x8xbf16, #tpu.memory_space<vmem>>, vector<1x40x8xbf16>
    %93 = vector.shape_cast %92 : vector<1x40x8xbf16> to vector<40x8xbf16>
    %c2_35 = arith.constant 2 : index
    %c0_36 = arith.constant 0 : index
    %c0_37 = arith.constant 0 : index
    %94 = vector.load %arg4[%c2_35, %c0_36, %c0_37] : memref<4x1x8xf32, #tpu.memory_space<vmem>>, vector<1x1x8xf32>
    %95 = vector.shape_cast %94 : vector<1x1x8xf32> to vector<1x8xf32>
    %c2_38 = arith.constant 2 : index
    %c0_39 = arith.constant 0 : index
    %c0_40 = arith.constant 0 : index
    %96 = vector.load %arg5[%c2_38, %c0_39, %c0_40] : memref<4x24x8xbf16, #tpu.memory_space<vmem>>, vector<1x24x8xbf16>
    %97 = vector.shape_cast %96 : vector<1x24x8xbf16> to vector<24x8xbf16>
    %c2_41 = arith.constant 2 : index
    %c0_42 = arith.constant 0 : index
    %c0_43 = arith.constant 0 : index
    %98 = vector.load %arg6[%c2_41, %c0_42, %c0_43] : memref<4x1x8xf32, #tpu.memory_space<vmem>>, vector<1x1x8xf32>
    %99 = vector.shape_cast %98 : vector<1x1x8xf32> to vector<1x8xf32>
    %100 = vector.extract_strided_slice %46 {offsets = [0, 0, 0], sizes = [1, 1, 8], strides = [1, 1, 1]} : vector<1x4x8xf32> to vector<1x1x8xf32>
    %101 = vector.shape_cast %100 : vector<1x1x8xf32> to vector<1x1x8xf32>
    %102 = vector.broadcast %101 : vector<1x1x8xf32> to vector<1x3x8xf32>
    %103 = vector.extract_strided_slice %46 {offsets = [0, 3, 0], sizes = [1, 1, 8], strides = [1, 1, 1]} : vector<1x4x8xf32> to vector<1x1x8xf32>
    %104 = vector.shape_cast %103 : vector<1x1x8xf32> to vector<1x1x8xf32>
    %105 = vector.broadcast %104 : vector<1x1x8xf32> to vector<1x3x8xf32>
    %106 = tpu.concatenate %102, %46, %105 in 1 : vector<1x3x8xf32>, vector<1x4x8xf32>, vector<1x3x8xf32> -> vector<1x10x8xf32>
    %107 = arith.truncf %106 : vector<1x10x8xf32> to vector<1x10x8xbf16>
    %108 = vector.extract_strided_slice %107 {offsets = [0, 0, 0], sizes = [1, 6, 8], strides = [1, 1, 1]} : vector<1x10x8xbf16> to vector<1x6x8xbf16>
    %109 = vector.extract_strided_slice %107 {offsets = [0, 1, 0], sizes = [1, 6, 8], strides = [1, 1, 1]} : vector<1x10x8xbf16> to vector<1x6x8xbf16>
    %110 = vector.extract_strided_slice %107 {offsets = [0, 2, 0], sizes = [1, 6, 8], strides = [1, 1, 1]} : vector<1x10x8xbf16> to vector<1x6x8xbf16>
    %111 = vector.extract_strided_slice %107 {offsets = [0, 3, 0], sizes = [1, 6, 8], strides = [1, 1, 1]} : vector<1x10x8xbf16> to vector<1x6x8xbf16>
    %112 = vector.extract_strided_slice %107 {offsets = [0, 4, 0], sizes = [1, 6, 8], strides = [1, 1, 1]} : vector<1x10x8xbf16> to vector<1x6x8xbf16>
    %113 = tpu.concatenate %108, %109, %110, %111, %112 in 2 : vector<1x6x8xbf16>, vector<1x6x8xbf16>, vector<1x6x8xbf16>, vector<1x6x8xbf16>, vector<1x6x8xbf16> -> vector<1x6x40xbf16>
    %114 = vector.shape_cast %113 : vector<1x6x40xbf16> to vector<6x40xbf16>
    %cst_44 = arith.constant dense<0.000000e+00> : vector<6x8xf32>
    %115 = tpu.matmul %114, %93, %cst_44 {dimension_numbers = #tpu.dot_dimension_numbers<[1], [0], [0], [1], [0, 0, 1, 1], [], []>} : vector<6x40xbf16>, vector<40x8xbf16>, vector<6x8xf32> -> vector<6x8xf32>
    %116 = vector.shape_cast %115 : vector<6x8xf32> to vector<1x6x8xf32>
    %117 = vector.shape_cast %95 : vector<1x8xf32> to vector<1x1x8xf32>
    %118 = vector.broadcast %117 : vector<1x1x8xf32> to vector<1x6x8xf32>
    %119 = arith.addf %116, %118 : vector<1x6x8xf32>
    %cst_45 = arith.constant 0.00999999977 : f32
    %120 = vector.broadcast %cst_45 : f32 to vector<1x6x8xf32>
    %121 = arith.mulf %120, %119 : vector<1x6x8xf32>
    %122 = arith.maximumf %119, %121 : vector<1x6x8xf32>
    %123 = arith.truncf %122 : vector<1x6x8xf32> to vector<1x6x8xbf16>
    %124 = vector.extract_strided_slice %123 {offsets = [0, 0, 0], sizes = [1, 4, 8], strides = [1, 1, 1]} : vector<1x6x8xbf16> to vector<1x4x8xbf16>
    %125 = vector.extract_strided_slice %123 {offsets = [0, 1, 0], sizes = [1, 4, 8], strides = [1, 1, 1]} : vector<1x6x8xbf16> to vector<1x4x8xbf16>
    %126 = vector.extract_strided_slice %123 {offsets = [0, 2, 0], sizes = [1, 4, 8], strides = [1, 1, 1]} : vector<1x6x8xbf16> to vector<1x4x8xbf16>
    %127 = tpu.concatenate %124, %125, %126 in 2 : vector<1x4x8xbf16>, vector<1x4x8xbf16>, vector<1x4x8xbf16> -> vector<1x4x24xbf16>
    %128 = vector.shape_cast %127 : vector<1x4x24xbf16> to vector<4x24xbf16>
    %cst_46 = arith.constant dense<0.000000e+00> : vector<4x8xf32>
    %129 = tpu.matmul %128, %97, %cst_46 {dimension_numbers = #tpu.dot_dimension_numbers<[1], [0], [0], [1], [0, 0, 1, 1], [], []>} : vector<4x24xbf16>, vector<24x8xbf16>, vector<4x8xf32> -> vector<4x8xf32>
    %130 = vector.shape_cast %129 : vector<4x8xf32> to vector<1x4x8xf32>
    %131 = vector.shape_cast %99 : vector<1x8xf32> to vector<1x1x8xf32>
    %132 = vector.broadcast %131 : vector<1x1x8xf32> to vector<1x4x8xf32>
    %133 = arith.addf %130, %132 : vector<1x4x8xf32>
    %134 = math.tanh %133 : vector<1x4x8xf32>
    %135 = arith.addf %91, %134 : vector<1x4x8xf32>
    %c0_47 = arith.constant 0 : index
    %c0_48 = arith.constant 0 : index
    %c0_49 = arith.constant 0 : index
    %136 = vector.load %arg7[%c0_47, %c0_48, %c0_49] : memref<1x4x8xf32, #tpu.memory_space<vmem>>, vector<1x4x8xf32>
    tpu.vector_store %arg7[%c0_47, %c0_48, %c0_49], %135 {strides = array<i32>} : memref<1x4x8xf32, #tpu.memory_space<vmem>>, vector<1x4x8xf32>,
    %c3 = arith.constant 3 : index
    %c0_50 = arith.constant 0 : index
    %c0_51 = arith.constant 0 : index
    %137 = vector.load %arg3[%c3, %c0_50, %c0_51] : memref<4x40x8xbf16, #tpu.memory_space<vmem>>, vector<1x40x8xbf16>
    %138 = vector.shape_cast %137 : vector<1x40x8xbf16> to vector<40x8xbf16>
    %c3_52 = arith.constant 3 : index
    %c0_53 = arith.constant 0 : index
    %c0_54 = arith.constant 0 : index
    %139 = vector.load %arg4[%c3_52, %c0_53, %c0_54] : memref<4x1x8xf32, #tpu.memory_space<vmem>>, vector<1x1x8xf32>
    %140 = vector.shape_cast %139 : vector<1x1x8xf32> to vector<1x8xf32>
    %c3_55 = arith.constant 3 : index
    %c0_56 = arith.constant 0 : index
    %c0_57 = arith.constant 0 : index
    %141 = vector.load %arg5[%c3_55, %c0_56, %c0_57] : memref<4x24x8xbf16, #tpu.memory_space<vmem>>, vector<1x24x8xbf16>
    %142 = vector.shape_cast %141 : vector<1x24x8xbf16> to vector<24x8xbf16>
    %c3_58 = arith.constant 3 : index
    %c0_59 = arith.constant 0 : index
    %c0_60 = arith.constant 0 : index
    %143 = vector.load %arg6[%c3_58, %c0_59, %c0_60] : memref<4x1x8xf32, #tpu.memory_space<vmem>>, vector<1x1x8xf32>
    %144 = vector.shape_cast %143 : vector<1x1x8xf32> to vector<1x8xf32>
    %145 = vector.extract_strided_slice %91 {offsets = [0, 0, 0], sizes = [1, 1, 8], strides = [1, 1, 1]} : vector<1x4x8xf32> to vector<1x1x8xf32>
    %146 = vector.shape_cast %145 : vector<1x1x8xf32> to vector<1x1x8xf32>
    %147 = vector.broadcast %146 : vector<1x1x8xf32> to vector<1x3x8xf32>
    %148 = vector.extract_strided_slice %91 {offsets = [0, 3, 0], sizes = [1, 1, 8], strides = [1, 1, 1]} : vector<1x4x8xf32> to vector<1x1x8xf32>
    %149 = vector.shape_cast %148 : vector<1x1x8xf32> to vector<1x1x8xf32>
    %150 = vector.broadcast %149 : vector<1x1x8xf32> to vector<1x3x8xf32>
    %151 = tpu.concatenate %147, %91, %150 in 1 : vector<1x3x8xf32>, vector<1x4x8xf32>, vector<1x3x8xf32> -> vector<1x10x8xf32>
    %152 = arith.truncf %151 : vector<1x10x8xf32> to vector<1x10x8xbf16>
    %153 = vector.extract_strided_slice %152 {offsets = [0, 0, 0], sizes = [1, 6, 8], strides = [1, 1, 1]} : vector<1x10x8xbf16> to vector<1x6x8xbf16>
    %154 = vector.extract_strided_slice %152 {offsets = [0, 1, 0], sizes = [1, 6, 8], strides = [1, 1, 1]} : vector<1x10x8xbf16> to vector<1x6x8xbf16>
    %155 = vector.extract_strided_slice %152 {offsets = [0, 2, 0], sizes = [1, 6, 8], strides = [1, 1, 1]} : vector<1x10x8xbf16> to vector<1x6x8xbf16>
    %156 = vector.extract_strided_slice %152 {offsets = [0, 3, 0], sizes = [1, 6, 8], strides = [1, 1, 1]} : vector<1x10x8xbf16> to vector<1x6x8xbf16>
    %157 = vector.extract_strided_slice %152 {offsets = [0, 4, 0], sizes = [1, 6, 8], strides = [1, 1, 1]} : vector<1x10x8xbf16> to vector<1x6x8xbf16>
    %158 = tpu.concatenate %153, %154, %155, %156, %157 in 2 : vector<1x6x8xbf16>, vector<1x6x8xbf16>, vector<1x6x8xbf16>, vector<1x6x8xbf16>, vector<1x6x8xbf16> -> vector<1x6x40xbf16>
    %159 = vector.shape_cast %158 : vector<1x6x40xbf16> to vector<6x40xbf16>
    %cst_61 = arith.constant dense<0.000000e+00> : vector<6x8xf32>
    %160 = tpu.matmul %159, %138, %cst_61 {dimension_numbers = #tpu.dot_dimension_numbers<[1], [0], [0], [1], [0, 0, 1, 1], [], []>} : vector<6x40xbf16>, vector<40x8xbf16>, vector<6x8xf32> -> vector<6x8xf32>
    %161 = vector.shape_cast %160 : vector<6x8xf32> to vector<1x6x8xf32>
    %162 = vector.shape_cast %140 : vector<1x8xf32> to vector<1x1x8xf32>
    %163 = vector.broadcast %162 : vector<1x1x8xf32> to vector<1x6x8xf32>
    %164 = arith.addf %161, %163 : vector<1x6x8xf32>
    %cst_62 = arith.constant 0.00999999977 : f32
    %165 = vector.broadcast %cst_62 : f32 to vector<1x6x8xf32>
    %166 = arith.mulf %165, %164 : vector<1x6x8xf32>
    %167 = arith.maximumf %164, %166 : vector<1x6x8xf32>
    %168 = arith.truncf %167 : vector<1x6x8xf32> to vector<1x6x8xbf16>
    %169 = vector.extract_strided_slice %168 {offsets = [0, 0, 0], sizes = [1, 4, 8], strides = [1, 1, 1]} : vector<1x6x8xbf16> to vector<1x4x8xbf16>
    %170 = vector.extract_strided_slice %168 {offsets = [0, 1, 0], sizes = [1, 4, 8], strides = [1, 1, 1]} : vector<1x6x8xbf16> to vector<1x4x8xbf16>
    %171 = vector.extract_strided_slice %168 {offsets = [0, 2, 0], sizes = [1, 4, 8], strides = [1, 1, 1]} : vector<1x6x8xbf16> to vector<1x4x8xbf16>
    %172 = tpu.concatenate %169, %170, %171 in 2 : vector<1x4x8xbf16>, vector<1x4x8xbf16>, vector<1x4x8xbf16> -> vector<1x4x24xbf16>
    %173 = vector.shape_cast %172 : vector<1x4x24xbf16> to vector<4x24xbf16>
    %cst_63 = arith.constant dense<0.000000e+00> : vector<4x8xf32>
    %174 = tpu.matmul %173, %142, %cst_63 {dimension_numbers = #tpu.dot_dimension_numbers<[1], [0], [0], [1], [0, 0, 1, 1], [], []>} : vector<4x24xbf16>, vector<24x8xbf16>, vector<4x8xf32> -> vector<4x8xf32>
    %175 = vector.shape_cast %174 : vector<4x8xf32> to vector<1x4x8xf32>
    %176 = vector.shape_cast %144 : vector<1x8xf32> to vector<1x1x8xf32>
    %177 = vector.broadcast %176 : vector<1x1x8xf32> to vector<1x4x8xf32>
    %178 = arith.addf %175, %177 : vector<1x4x8xf32>
    %179 = math.tanh %178 : vector<1x4x8xf32>
    %180 = arith.subf %46, %179 : vector<1x4x8xf32>
    %c0_64 = arith.constant 0 : index
    %c0_65 = arith.constant 0 : index
    %c0_66 = arith.constant 0 : index
    %181 = vector.load %arg8[%c0_64, %c0_65, %c0_66] : memref<1x4x8xf32, #tpu.memory_space<vmem>>, vector<1x4x8xf32>
    tpu.vector_store %arg8[%c0_64, %c0_65, %c0_66], %180 {strides = array<i32>} : memref<1x4x8xf32, #tpu.memory_space<vmem>>, vector<1x4x8xf32>,
    return
  }
  func.func @transform_0(%arg0: i32) -> (i32, i32, i32) {
    %c0_i32 = arith.constant 0 : i32
    %c0_i32_0 = arith.constant 0 : i32
    %c0_i32_1 = arith.constant 0 : i32
    return %arg0, %c0_i32, %c0_i32_0 : i32, i32, i32
  }
  func.func @transform_1(%arg0: i32) -> (i32, i32, i32) {
    %c0_i32 = arith.constant 0 : i32
    %c0_i32_0 = arith.constant 0 : i32
    %c0_i32_1 = arith.constant 0 : i32
    return %arg0, %c0_i32, %c0_i32_0 : i32, i32, i32
  }
  func.func @transform_2(%arg0: i32) -> (i32, i32, i32) {
    %c0_i32 = arith.constant 0 : i32
    %c0_i32_0 = arith.constant 0 : i32
    %c0_i32_1 = arith.constant 0 : i32
    %c0_i32_2 = arith.constant 0 : i32
    return %c0_i32, %c0_i32_0, %c0_i32_1 : i32, i32, i32
  }
  func.func @transform_3(%arg0: i32) -> (i32, i32, i32) {
    %c0_i32 = arith.constant 0 : i32
    %c0_i32_0 = arith.constant 0 : i32
    %c0_i32_1 = arith.constant 0 : i32
    %c0_i32_2 = arith.constant 0 : i32
    return %c0_i32, %c0_i32_0, %c0_i32_1 : i32, i32, i32
  }
  func.func @transform_4(%arg0: i32) -> (i32, i32, i32) {
    %c0_i32 = arith.constant 0 : i32
    %c0_i32_0 = arith.constant 0 : i32
    %c0_i32_1 = arith.constant 0 : i32
    %c0_i32_2 = arith.constant 0 : i32
    return %c0_i32, %c0_i32_0, %c0_i32_1 : i32, i32, i32
  }
  func.func @transform_5(%arg0: i32) -> (i32, i32, i32) {
    %c0_i32 = arith.constant 0 : i32
    %c0_i32_0 = arith.constant 0 : i32
    %c0_i32_1 = arith.constant 0 : i32
    %c0_i32_2 = arith.constant 0 : i32
    return %c0_i32, %c0_i32_0, %c0_i32_1 : i32, i32, i32
  }
  func.func @transform_6(%arg0: i32) -> (i32, i32, i32) {
    %c0_i32 = arith.constant 0 : i32
    %c0_i32_0 = arith.constant 0 : i32
    %c0_i32_1 = arith.constant 0 : i32
    return %arg0, %c0_i32, %c0_i32_0 : i32, i32, i32
  }
  func.func @transform_7(%arg0: i32) -> (i32, i32, i32) {
    %c0_i32 = arith.constant 0 : i32
    %c0_i32_0 = arith.constant 0 : i32
    %c0_i32_1 = arith.constant 0 : i32
    return %arg0, %c0_i32, %c0_i32_0 : i32, i32, i32
  }
}

</mosaic_0001>

<bundles_post_ra>
// kernel: _lambda_.3
= control target key start
LH: loop header
LB: loop body
LE: loop exit
PB: predicated region body
PF: predicated region fallthrough
CT: control target
= control target key end

     0   :  { %vm51_vm0 = vcmask 1042432   ;;  %vm53_vm1 = vcmask 1044480   ;;  %s984_s9 = smov 16   ;;  %s985_s10 = smov 48   ;;  %vm79_vm2 = vcmask 130048   ;;  %vm83_vm3 = vcmask 261120   ;;  %s1252_s1 = inlined_call_operand.vmem [shape: f32[1,2,16], index: 1, kind: input, shape index: {}]   ;;  %s1253_s0 = inlined_call_operand.vmem [shape: f32[1,2,16], index: 0, kind: input, shape index: {}]   ;;  %s1254_s2 = inlined_call_operand.vmem [shape: bf16[4,80,16], index: 2, kind: input, shape index: {}]   ;;  %s1255_s3 = inlined_call_operand.vmem [shape: f32[4,1,16], index: 3, kind: input, shape index: {}]   ;;  %s1256_s5 = inlined_call_operand.vmem [shape: f32[4,1,16], index: 5, kind: input, shape index: {}]   ;;  %s1257_s4 = inlined_call_operand.vmem [shape: bf16[4,48,16], index: 4, kind: input, shape index: {}]   ;;  %s1258_s6 = inlined_call_operand.vmem [shape: f32[1,2,16], index: 6, kind: output, shape index: {0}]   ;;  %s1259_s7 = inlined_call_operand.vmem [shape: f32[1,2,16], index: 7, kind: output, shape index: {1}]  }
   0x1   :  { %v1031_v0 = vld [vmem:[%s1252_s1] sm:$0x3]  ;;  %v940_v6 = vld [vmem:[%s1254_s2 + $0x48] sm:$0xff]  ;;  %s986_s11 = smov 32   ;;  %s987_s12 = smov 64   ;;  %v938_v39 = vld [vmem:[%s1254_s2 + $0x38] sm:$0xff] }
   0x2   :  { %v1036_v1 = vld [vmem:[%s1253_s0] sm:$0x3]  ;;  %v228_v2 = vperm.slane %v1031_v0, 0  ;;  %v229_v3 = vperm.slane %v1031_v0, 1  ;;  %v231_v4 = vrot.slane %v1031_v0, 5  ;;  %303 = vmatpush.bf16.msra.mxu2 %v940_v6  ;;  %v931_v40 = vld [vmem:[%s1254_s2 + $0x18] sm:$0xff] }
   0x3   :  { %v46_v5 = vperm.slane %v1036_v1, 0  ;;  %v47_v7 = vperm.slane %v1036_v1, 1  ;;  %v49_v8 = vrot.slane %v1036_v1, 5  ;;  %v932_v9 = vld [vmem:[%s1254_s2 + $0x20] sm:$0xff]  ;;  %v937_v41 = vld [vmem:[%s1254_s2 + $0x30] sm:$0xff]  ;;  %v936_v43 = vld [vmem:[%s1254_s2 + $0x28] sm:$0xff] }
   0x4   :  { %v233_v10 = vsel %vm51_vm0, %v228_v2, %v231_v4  ;;  %v939_v11 = vld [vmem:[%s1254_s2 + $0x40] sm:$0xff]  ;;  %128 = vmatpush.bf16.msra.mxu0 %v932_v9  ;;  %v930_v42 = vld [vmem:[%s1254_s2 + $0x10] sm:$0xff]  ;;  %v929_v44 = vld [vmem:[%s1254_s2 + $0x8] sm:$0xff]  ;;  %vm86_vm4 = vcmask 392192   ;;  %vm89_vm5 = vcmask 523264   ;;  %vm122_vm6 = vcmask 654336  }
   0x5   :  { %v234_v12 = vsel %vm53_vm1, %v233_v10, %v229_v3  ;;  %v52_v13 = vsel %vm51_vm0, %v46_v5, %v49_v8  ;;  %v928_v45 = vld [vmem:[%s1254_s2] sm:$0xff]  ;;  %vm554_vm7 = vcmask 123904  }
   0x6   :  { %v235_v14 = vpack.c.bf16 %v234_v12, %v234_v12  ;;  %v54_v15 = vsel %vm53_vm1, %v52_v13, %v47_v7  ;;  %304 = vmatpush.bf16.msra.mxu2 %v939_v11  ;;  %v964_v62 = vld [vmem:[%s1255_s3 + $0x1] ss:$0 sm:$0xff]  ;;  %v965_v63 = vld [vmem:[%s1255_s3] ss:$0 sm:$0xff] }
   0x7   :  { %v1057_v16 = vpack.c.bf16 %v54_v15, %v54_v15 }
   0x8   :  { %v237_v17 = vunpack.c.l.b16 %v235_v14  ;;  %129 = vmatpush.bf16.msra.mxu0 %v931_v40 }
   0x9   :  { %v57_v18 = vunpack.c.l.b16 %v1057_v16 }
   0xa   :  { %v238_v19 = vpack.c.b16 %v237_v17, %v237_v17  ;;  %305 = vmatpush.bf16.msra.mxu2 %v938_v39 }
   0xb   :  { %v58_v20 = vpack.c.b16 %v57_v18, %v57_v18 }
   0xc   :  { %v240_v21 = vshrl.u32 %v238_v19, 16  ;;  %v242_v22 = vshll.u32 %v238_v19, 16  ;;  %v248_v32 = vrot.slane %v238_v19, 1  ;;  %v256_v33 = vrot.slane %v238_v19, 2  ;;  %130 = vmatpush.bf16.msra.mxu0 %v930_v42  ;;  %v966_v42 = vld [vmem:[%s1256_s5] ss:$0 sm:$0xff] }
   0xd   :  { %v62_v23 = vshll.u32 %v58_v20, 16  ;;  %v60_v27 = vshrl.u32 %v58_v20, 16  ;;  %v68_v34 = vrot.slane %v58_v20, 1  ;;  %v76_v38 = vrot.slane %v58_v20, 2 }
   0xe   :  { %v244_v24 = vrot.slane %v242_v22, 1  ;;  %v251_v25 = vrot.slane %v240_v21, 1  ;;  %v252_v26 = vrot.slane %v242_v22, 2  ;;  %306 = vmatpush.bf16.msra.mxu2 %v937_v41 }
   0xf   :  { %v64_v28 = vrot.slane %v62_v23, 1  ;;  %v71_v35 = vrot.slane %v60_v27, 1  ;;  %v72_v36 = vrot.slane %v62_v23, 2 }
  0x10   :  { %v245_v29 = vor.u32 %v244_v24, %v240_v21  ;;  %v253_v30 = vor.u32 %v252_v26, %v251_v25  ;;  %131 = vmatpush.bf16.msra.mxu0 %v929_v44 }
  0x11   :  { %v65_v31 = vor.u32 %v64_v28, %v60_v27  ;;  %v73_v37 = vor.u32 %v72_v36, %v71_v35  ;;  %v943_v28 = vld [vmem:[%s1257_s4 + $0x28] sm:$0xff] }
  0x12   :  { %246 = vrot.lane.b32.xlu0 %v245_v29, %s984_s9  ;;  %254 = vrot.lane.b32.xlu1 %v253_v30, %s985_s10  ;;  %v935_v29 = vld [vmem:[%s1257_s4 + $0x10] sm:$0xff]  ;;  %v942_v30 = vld [vmem:[%s1257_s4 + $0x20] sm:$0xff] }
  0x13   :  { %66 = vrot.lane.b32.xlu2 %v65_v31, %s984_s9  ;;  %307 = vmatpush.bf16.msra.mxu2 %v936_v43  ;;  %v941_v31 = vld [vmem:[%s1257_s4 + $0x18] sm:$0xff]  ;;  %v967_v43 = vld [vmem:[%s1256_s5 + $0x1] ss:$0 sm:$0xff] }
  0x14   :  { %132 = vmatpush.bf16.msra.mxu0 %v928_v45  ;;  %365 = vmatpush.bf16.msra.mxu3 %v943_v28  ;;  %v948_v28 = vld [vmem:[%s1254_s2 + $0x70] sm:$0xff] }
  0x15   :  { %190 = vmatpush.bf16.msra.mxu1 %v935_v29  ;;  %v956_v29 = vld [vmem:[%s1254_s2 + $0x98] sm:$0xff] }
  0x18   :  { %366 = vmatpush.bf16.msra.mxu3 %v942_v30  ;;  %653 = vmatpush.bf16.msrb.mxu0 %v956_v29  ;;  %v947_v30 = vld [vmem:[%s1254_s2 + $0x68] sm:$0xff] }
  0x1a   :  { %249 = vrot.lane.b32.xlu0 %v248_v32, %s986_s11  ;;  %257 = vrot.lane.b32.xlu1 %v256_v33, %s987_s12  ;;  %v934_v32 = vld [vmem:[%s1257_s4 + $0x8] sm:$0xff]  ;;  %v933_v33 = vld [vmem:[%s1257_s4] sm:$0xff] }
  0x1b   :  { %69 = vrot.lane.b32.xlu2 %v68_v34, %s986_s11  ;;  %191 = vmatpush.bf16.msra.mxu1 %v934_v32  ;;  %v946_v32 = vld [vmem:[%s1254_s2 + $0x60] sm:$0xff] }
  0x1c   :  { %367 = vmatpush.bf16.msra.mxu3 %v941_v31  ;;  %v955_v31 = vld [vmem:[%s1254_s2 + $0x90] sm:$0xff] }
  0x1d   :  { %654 = vmatpush.bf16.msrb.mxu0 %v955_v31 }
  0x1f   :  { %192 = vmatpush.bf16.msra.mxu1 %v933_v33  ;;  %v954_v33 = vld [vmem:[%s1254_s2 + $0x88] sm:$0xff] }
  0x21   :  { %655 = vmatpush.bf16.msrb.mxu0 %v954_v33 }
  0x22   :  { %74 = vrot.lane.b32.xlu0 %v73_v37, %s985_s10  ;;  %77 = vrot.lane.b32.xlu1 %v76_v38, %s987_s12 }
  0x23   :  { %478 = vmatpush.bf16.msrb.mxu1 %v948_v28 }
  0x27   :  { %479 = vmatpush.bf16.msrb.mxu1 %v947_v30 }
  0x2b   :  { %480 = vmatpush.bf16.msrb.mxu1 %v946_v32 }
  0x6d   :  { %v67_v48 = vpop.permute.xlu2 %66 }
  0x6e   :  { %v82_v55 = vsel %vm79_vm2, %v1057_v16, %v67_v48 }
  0x75   :  { %v70_v56 = vpop.permute.xlu2 %69 }
  0x76   :  { %v85_v57 = vsel %vm83_vm3, %v82_v55, %v70_v56 }
  0x84   :  { %v247_v46 = vpop.permute.xlu0 %246  ;;  %v255_v47 = vpop.permute.xlu1 %254 }
  0x85   :  { %v261_v49 = vsel %vm79_vm2, %v235_v14, %v247_v46 }
  0x8c   :  { %v250_v50 = vpop.permute.xlu0 %249  ;;  %v258_v51 = vpop.permute.xlu1 %257 }
  0x8d   :  { %v263_v52 = vsel %vm83_vm3, %v261_v49, %v250_v50 }
  0x8e   :  { %v265_v53 = vsel %vm86_vm4, %v263_v52, %v255_v47 }
  0x8f   :  { %v267_v54 = vsel %vm89_vm5, %v265_v53, %v258_v51 }
  0x90   :  { %810 = vmatmul.msk.bf16.vlgmr.msra.gmra.mxu2 %vm122_vm6, %v267_v54 }
  0x94   :  { %v75_v58 = vpop.permute.xlu0 %74  ;;  %v78_v59 = vpop.permute.xlu1 %77 }
  0x95   :  { %v88_v60 = vsel %vm86_vm4, %v85_v57, %v75_v58 }
  0x96   :  { %v91_v61 = vsel %vm89_vm5, %v88_v60, %v78_v59 }
  0x97   :  { %758 = vmatmul.msk.bf16.vlgmr.msra.gmra.mxu0 %vm122_vm6, %v91_v61 }
 0x113   :  { %v309_v2 = vpop.f32.mrf.mxu2 }
 0x114   :  { %v316_v3 = vadd.f32 %v964_v62, %v309_v2  ;;  %v134_v4 = vpop.f32.mrf.mxu0 }
 0x115   :  { %v141_v5 = vadd.f32 %v965_v63, %v134_v4 }
 0x116   :  { %v317_v6 = vmul.f32 0.01, %v316_v3 }
 0x117   :  { %v142_v7 = vmul.f32 0.01, %v141_v5 }
 0x118   :  { %v318_v8 = vmax.f32 %v316_v3, %v317_v6 }
 0x119   :  { %v143_v9 = vmax.f32 %v141_v5, %v142_v7 }
 0x11a   :  { %v319_v10 = vpack.c.bf16 %v318_v8, %v318_v8 }
 0x11b   :  { %v144_v11 = vpack.c.bf16 %v143_v9, %v143_v9  ;;  %v311_v12 = vpop.f32.mrf.mxu2 }
 0x11c   :  { %v321_v13 = vunpack.c.l.b16 %v319_v10  ;;  %v136_v14 = vpop.f32.mrf.mxu0 }
 0x11d   :  { %v146_v15 = vunpack.c.l.b16 %v144_v11 }
 0x11e   :  { %v322_v16 = vpack.c.b16 %v321_v13, %v321_v13 }
 0x11f   :  { %v147_v17 = vpack.c.b16 %v146_v15, %v146_v15 }
 0x120   :  { %v332_v18 = vrot.slane %v322_v16, 1  ;;  %v326_v19 = vshll.u32 %v322_v16, 16  ;;  %v324_v21 = vshrl.u32 %v322_v16, 16 }
 0x121   :  { %v151_v20 = vshll.u32 %v147_v17, 16  ;;  %v149_v23 = vshrl.u32 %v147_v17, 16  ;;  %v157_v27 = vrot.slane %v147_v17, 1 }
 0x122   :  { %333 = vrot.lane.b32.xlu0 %v332_v18, %s986_s11  ;;  %v328_v22 = vrot.slane %v326_v19, 1 }
 0x123   :  { %v153_v24 = vrot.slane %v151_v20, 1 }
 0x124   :  { %v329_v25 = vor.u32 %v328_v22, %v324_v21 }
 0x125   :  { %v154_v26 = vor.u32 %v153_v24, %v149_v23 }
 0x126   :  { %330 = vrot.lane.b32.xlu2 %v329_v25, %s984_s9 }
 0x127   :  { %155 = vrot.lane.b32.xlu1 %v154_v26, %s984_s9 }
 0x12e   :  { %158 = vrot.lane.b32.xlu2 %v157_v27, %s986_s11 }
 0x180   :  { %v331_v34 = vpop.permute.xlu2 %330 }
 0x181   :  { %v337_v35 = vsel %vm79_vm2, %v319_v10, %v331_v34  ;;  %v945_v34 = vld [vmem:[%s1254_s2 + $0x58] sm:$0xff] }
 0x182   :  { %481 = vmatpush.bf16.msrb.mxu1 %v945_v34  ;;  %v970_v34 = vld [vmem:[%s1256_s5 + $0x2] ss:$0 sm:$0xff] }
 0x188   :  { %v159_v39 = vpop.permute.xlu2 %158 }
 0x194   :  { %v334_v36 = vpop.permute.xlu0 %333 }
 0x195   :  { %v339_v37 = vsel %vm83_vm3, %v337_v35, %v334_v36  ;;  %v953_v35 = vld [vmem:[%s1254_s2 + $0x80] sm:$0xff]  ;;  %v944_v36 = vld [vmem:[%s1254_s2 + $0x50] sm:$0xff] }
 0x196   :  { %823 = vmatmul.msk.bf16.vlgmr.msra.gmra.mxu3 %vm86_vm4, %v339_v37  ;;  %656 = vmatpush.bf16.msrb.mxu0 %v953_v35  ;;  %v952_v37 = vld [vmem:[%s1254_s2 + $0x78] sm:$0xff] }
 0x197   :  { %482 = vmatpush.bf16.msrb.mxu1 %v944_v36 }
 0x199   :  { %v156_v38 = vpop.permute.xlu1 %155 }
 0x19a   :  { %v162_v40 = vsel %vm79_vm2, %v144_v11, %v156_v38  ;;  %657 = vmatpush.bf16.msrb.mxu0 %v952_v37  ;;  %v971_v37 = vld [vmem:[%s1256_s5 + $0x3] ss:$0 sm:$0xff] }
 0x19b   :  { %v164_v41 = vsel %vm83_vm3, %v162_v40, %v159_v39 }
 0x19c   :  { %771 = vmatmul.msk.bf16.vlgmr.msra.gmra.mxu1 %vm86_vm4, %v164_v41 }
 0x219   :  { %v194_v44 = vpop.f32.mrf.mxu1  ;;  %v369_v45 = vpop.f32.mrf.mxu3 }
 0x21a   :  { %v201_v46 = vadd.f32 %v966_v42, %v194_v44  ;;  %v376_v47 = vadd.f32 %v967_v43, %v369_v45 }
 0x21c   :  { %972 = vtanh.f32 %v201_v46 }
 0x21d   :  { %974 = vtanh.f32 %v376_v47 }
 0x221   :  { %v196_v48 = vpop.f32.mrf.mxu1  ;;  %v371_v49 = vpop.f32.mrf.mxu3 }
 0x222   :  { %v973_v50 = vpop.eup %972 }
 0x223   :  { %v975_v51 = vpop.eup %974  ;;  %v203_v52 = vmul.f32 1.442695, %v973_v50 }
 0x224   :  { %v378_v53 = vmul.f32 1.442695, %v975_v51 }
 0x225   :  { %976 = vpow2.f32 %v203_v52 }
 0x226   :  { %978 = vpow2.f32 %v378_v53 }
 0x22b   :  { %v977_v54 = vpop.eup %976 }
 0x22c   :  { %v979_v55 = vpop.eup %978  ;;  %v1141_v56 = vmul.f32 %v977_v54, %v1031_v0  ;;  %v968_v54 = vld [vmem:[%s1255_s3 + $0x2] ss:$0 sm:$0xff] }
 0x22d   :  { %v1144_v57 = vmul.f32 %v979_v55, %v1036_v1  ;;  %v969_v55 = vld [vmem:[%s1255_s3 + $0x3] ss:$0 sm:$0xff] }
 0x22e   :  { %v403_v58 = vperm.slane %v1141_v56, 0  ;;  %v404_v59 = vperm.slane %v1141_v56, 1  ;;  %v406_v60 = vrot.slane %v1141_v56, 5 }
 0x22f   :  { %v578_v61 = vperm.slane %v1144_v57, 0  ;;  %v579_v62 = vperm.slane %v1144_v57, 1  ;;  %v581_v63 = vrot.slane %v1144_v57, 5 }
 0x230   :  { %v408_v2 = vsel %vm51_vm0, %v403_v58, %v406_v60 }
 0x231   :  { %v409_v0 = vsel %vm53_vm1, %v408_v2, %v404_v59  ;;  %v583_v3 = vsel %vm51_vm0, %v578_v61, %v581_v63 }
 0x232   :  { %v410_v1 = vpack.c.bf16 %v409_v0, %v409_v0  ;;  %v584_v4 = vsel %vm53_vm1, %v583_v3, %v579_v62 }
 0x233   :  { %v585_v5 = vpack.c.bf16 %v584_v4, %v584_v4 }
 0x234   :  { %v412_v6 = vunpack.c.l.b16 %v410_v1 }
 0x235   :  { %v587_v7 = vunpack.c.l.b16 %v585_v5 }
 0x236   :  { %v413_v8 = vpack.c.b16 %v412_v6, %v412_v6 }
 0x237   :  { %v588_v9 = vpack.c.b16 %v587_v7, %v587_v7 }
 0x238   :  { %v423_v10 = vrot.slane %v413_v8, 1  ;;  %v415_v11 = vshrl.u32 %v413_v8, 16  ;;  %v417_v12 = vshll.u32 %v413_v8, 16  ;;  %v431_v27 = vrot.slane %v413_v8, 2 }
 0x239   :  { %v590_v13 = vshrl.u32 %v588_v9, 16  ;;  %v592_v14 = vshll.u32 %v588_v9, 16  ;;  %v598_v25 = vrot.slane %v588_v9, 1  ;;  %v606_v26 = vrot.slane %v588_v9, 2 }
 0x23a   :  { %424 = vrot.lane.b32.xlu2 %v423_v10, %s986_s11  ;;  %v426_v15 = vrot.slane %v415_v11, 1  ;;  %v427_v16 = vrot.slane %v417_v12, 2  ;;  %v419_v17 = vrot.slane %v417_v12, 1 }
 0x23b   :  { %v601_v20 = vrot.slane %v590_v13, 1  ;;  %v602_v21 = vrot.slane %v592_v14, 2  ;;  %v594_v23 = vrot.slane %v592_v14, 1 }
 0x23c   :  { %v428_v18 = vor.u32 %v427_v16, %v426_v15  ;;  %v420_v19 = vor.u32 %v419_v17, %v415_v11 }
 0x23d   :  { %v603_v22 = vor.u32 %v602_v21, %v601_v20  ;;  %v595_v24 = vor.u32 %v594_v23, %v590_v13  ;;  %v951_v20 = vld [vmem:[%s1257_s4 + $0x40] sm:$0xff]  ;;  %v959_v21 = vld [vmem:[%s1257_s4 + $0x58] sm:$0xff]  ;;  %v958_v23 = vld [vmem:[%s1257_s4 + $0x50] sm:$0xff] }
 0x23e   :  { %429 = vrot.lane.b32.xlu1 %v428_v18, %s985_s10  ;;  %421 = vrot.lane.b32.xlu0 %v420_v19, %s984_s9 }
 0x23f   :  { %540 = vmatpush.bf16.msrb.mxu3 %v951_v20  ;;  %715 = vmatpush.bf16.msrb.mxu2 %v959_v21 }
 0x242   :  { %604 = vrot.lane.b32.xlu2 %v603_v22, %s985_s10  ;;  %v950_v22 = vld [vmem:[%s1257_s4 + $0x38] sm:$0xff] }
 0x243   :  { %541 = vmatpush.bf16.msrb.mxu3 %v950_v22  ;;  %716 = vmatpush.bf16.msrb.mxu2 %v958_v23 }
 0x246   :  { %596 = vrot.lane.b32.xlu1 %v595_v24, %s984_s9  ;;  %599 = vrot.lane.b32.xlu0 %v598_v25, %s986_s11  ;;  %v949_v24 = vld [vmem:[%s1257_s4 + $0x30] sm:$0xff]  ;;  %v957_v25 = vld [vmem:[%s1257_s4 + $0x48] sm:$0xff] }
 0x247   :  { %542 = vmatpush.bf16.msrb.mxu3 %v949_v24  ;;  %717 = vmatpush.bf16.msrb.mxu2 %v957_v25 }
 0x24e   :  { %607 = vrot.lane.b32.xlu1 %v606_v26, %s987_s12  ;;  %432 = vrot.lane.b32.xlu0 %v431_v27, %s987_s12 }
 0x294   :  { %v425_v40 = vpop.permute.xlu2 %424 }
 0x29c   :  { %v605_v47 = vpop.permute.xlu2 %604 }
 0x2b0   :  { %v430_v38 = vpop.permute.xlu1 %429  ;;  %v422_v39 = vpop.permute.xlu0 %421 }
 0x2b1   :  { %v436_v43 = vsel %vm79_vm2, %v410_v1, %v422_v39 }
 0x2b2   :  { %v438_v45 = vsel %vm83_vm3, %v436_v43, %v425_v40 }
 0x2b3   :  { %v440_v50 = vsel %vm86_vm4, %v438_v45, %v430_v38 }
 0x2b8   :  { %v597_v41 = vpop.permute.xlu1 %596  ;;  %v600_v42 = vpop.permute.xlu0 %599 }
 0x2b9   :  { %v611_v44 = vsel %vm79_vm2, %v585_v5, %v597_v41 }
 0x2ba   :  { %v613_v46 = vsel %vm83_vm3, %v611_v44, %v600_v42 }
 0x2bb   :  { %v615_v49 = vsel %vm86_vm4, %v613_v46, %v605_v47 }
 0x2c0   :  { %v608_v48 = vpop.permute.xlu1 %607  ;;  %v433_v51 = vpop.permute.xlu0 %432 }
 0x2c1   :  { %v617_v52 = vsel %vm89_vm5, %v615_v49, %v608_v48  ;;  %v442_v53 = vsel %vm89_vm5, %v440_v50, %v433_v51 }
 0x2c2   :  { %862 = vmatmul.msk.bf16.vlgmr.msrb.gmra.mxu1 %vm122_vm6, %v442_v53  ;;  %914 = vmatmul.msk.bf16.vlgmr.msrb.gmra.mxu0 %vm122_vm6, %v617_v52 }
 0x33f   :  { %v484_v58 = vpop.f32.mrf.mxu1  ;;  %v659_v59 = vpop.f32.mrf.mxu0 }
 0x340   :  { %v491_v60 = vadd.f32 %v968_v54, %v484_v58  ;;  %v666_v61 = vadd.f32 %v969_v55, %v659_v59 }
 0x342   :  { %v492_v62 = vmul.f32 0.01, %v491_v60  ;;  %v667_v63 = vmul.f32 0.01, %v666_v61 }
 0x344   :  { %v493_v2 = vmax.f32 %v491_v60, %v492_v62  ;;  %v668_v0 = vmax.f32 %v666_v61, %v667_v63 }
 0x346   :  { %v494_v3 = vpack.c.bf16 %v493_v2, %v493_v2  ;;  %v669_v1 = vpack.c.bf16 %v668_v0, %v668_v0 }
 0x347   :  { %v486_v4 = vpop.f32.mrf.mxu1  ;;  %v661_v5 = vpop.f32.mrf.mxu0 }
 0x348   :  { %v496_v6 = vunpack.c.l.b16 %v494_v3  ;;  %v671_v7 = vunpack.c.l.b16 %v669_v1 }
 0x34a   :  { %v497_v8 = vpack.c.b16 %v496_v6, %v496_v6  ;;  %v672_v9 = vpack.c.b16 %v671_v7, %v671_v7 }
 0x34c   :  { %v507_v10 = vrot.slane %v497_v8, 1  ;;  %v676_v11 = vshll.u32 %v672_v9, 16  ;;  %v501_v12 = vshll.u32 %v497_v8, 16  ;;  %v674_v13 = vshrl.u32 %v672_v9, 16 }
 0x34d   :  { %v499_v15 = vshrl.u32 %v497_v8, 16  ;;  %v682_v19 = vrot.slane %v672_v9, 1 }
 0x34e   :  { %508 = vrot.lane.b32.xlu1 %v507_v10, %s986_s11  ;;  %v678_v14 = vrot.slane %v676_v11, 1  ;;  %v503_v16 = vrot.slane %v501_v12, 1 }
 0x350   :  { %v679_v17 = vor.u32 %v678_v14, %v674_v13  ;;  %v504_v18 = vor.u32 %v503_v16, %v499_v15 }
 0x352   :  { %680 = vrot.lane.b32.xlu0 %v679_v17, %s984_s9  ;;  %505 = vrot.lane.b32.xlu2 %v504_v18, %s984_s9 }
 0x35a   :  { %683 = vrot.lane.b32.xlu2 %v682_v19, %s986_s11 }
 0x3ac   :  { %v506_v26 = vpop.permute.xlu2 %505 }
 0x3ad   :  { %v512_v27 = vsel %vm79_vm2, %v494_v3, %v506_v26 }
 0x3b4   :  { %v684_v31 = vpop.permute.xlu2 %683 }
 0x3c0   :  { %v509_v28 = vpop.permute.xlu1 %508 }
 0x3c1   :  { %v514_v29 = vsel %vm83_vm3, %v512_v27, %v509_v28 }
 0x3c2   :  { %875 = vmatmul.msk.bf16.vlgmr.msrb.gmra.mxu3 %vm86_vm4, %v514_v29 }
 0x3c4   :  { %v681_v30 = vpop.permute.xlu0 %680 }
 0x3c5   :  { %v687_v32 = vsel %vm79_vm2, %v669_v1, %v681_v30 }
 0x3c6   :  { %v689_v33 = vsel %vm83_vm3, %v687_v32, %v684_v31 }
 0x3c7   :  { %927 = vmatmul.msk.bf16.vlgmr.msrb.gmra.mxu2 %vm86_vm4, %v689_v33 }
 0x445   :  { %v544_v35 = vpop.f32.mrf.mxu3 }
 0x446   :  { %v551_v36 = vadd.f32 %v970_v34, %v544_v35 }
 0x448   :  { %980 = vtanh.f32 %v551_v36 }
 0x44a   :  { %v719_v38 = vpop.f32.mrf.mxu2 }
 0x44b   :  { %v726_v39 = vadd.f32 %v971_v37, %v719_v38 }
 0x44d   :  { %982 = vtanh.f32 %v726_v39  ;;  %v546_v40 = vpop.f32.mrf.mxu3 }
 0x44e   :  { %v981_v41 = vpop.eup %980 }
 0x44f   :  { %v553_v42 = vadd.f32 %v981_v41, %v1144_v57 }
 0x451   :  { %555 = vst.msk [vmem:[%s1258_s6] sm:$0x3] %vm554_vm7, %v553_v42 }
 0x452   :  { %v721_v43 = vpop.f32.mrf.mxu2 }
 0x453   :  { %v983_v44 = vpop.eup %982 }
 0x454   :  { %v728_v45 = vsub.f32 %v1141_v56, %v983_v44 }
 0x456   :  { %729 = vst.msk [vmem:[%s1259_s7] sm:$0x3] %vm554_vm7, %v728_v45 }

// kernel: _lambda_.2
= control target key start
LH: loop header
LB: loop body
LE: loop exit
PB: predicated region body
PF: predicated region fallthrough
CT: control target
= control target key end

     0   :  { %13 = vsyncpa [#allocation3], 0  ;;  %s824_s27 = smov [#allocation2]   ;;  %s825_s29 = smov 64   ;;  %s1046_s0 = inlined_call_operand.vmem [shape: f32[1,4,8], index: 0, kind: input, shape index: {}]   ;;  %s1047_s1 = inlined_call_operand.vmem [shape: f32[1,4,8], index: 1, kind: input, shape index: {}]   ;;  %s1048_s2 = inlined_call_operand.hbm [shape: bf16[4,40,8], index: 2, kind: input, shape index: {}]   ;;  %s1049_s3 = inlined_call_operand.vmem [shape: f32[4,1,8], index: 3, kind: input, shape index: {}]   ;;  %s1050_s4 = inlined_call_operand.vmem [shape: bf16[4,24,8], index: 4, kind: input, shape index: {}]   ;;  %s1051_s5 = inlined_call_operand.vmem [shape: f32[4,1,8], index: 5, kind: input, shape index: {}]   ;;  %s1052_s6 = inlined_call_operand.vmem [shape: f32[1,4,8], index: 6, kind: output, shape index: {0}]   ;;  %s1053_s7 = inlined_call_operand.vmem [shape: f32[1,4,8], index: 7, kind: output, shape index: {1}]  }
   0x1   :  { %s22_s26 = sshll.u32 %s1048_s2, 4  ;;  %s24_s28 = sshll.u32 %s824_s27, 4  ;;  %s23_s26 = int_to_ptr.hbm [resolvable:$true] %s22_s26  ;;  %s25_s28 = int_to_ptr.vmem [resolvable:$true] %s24_s28 }
   0x2   :  { %s826_s30 = smov 4  }
   0x3   :  { %30 = dma.hbm_to_vmem [thread:$0]  %s23_s26, 1280, %s25_s28, [#allocation3], %s825_s29, %s825_s29, %s826_s30  }
   0x4   :  { %822 = dma.done.wait [#allocation3], 1280  }
   0x5   :  { %823 = vsyncadd [#allocation3], 4294966016  ;;  %vm59_vm0 = vcmask 1042432   ;;  %vm61_vm1 = vcmask 1046528   ;;  %v877_v0 = vld [vmem:[%s1047_s1] sm:$0xf] }
   0x6   :  { %v882_v1 = vld [vmem:[%s1046_s0] sm:$0xf]  ;;  %v220_v2 = vperm.slane %v877_v0, 0  ;;  %v221_v3 = vperm.slane %v877_v0, 3  ;;  %v223_v4 = vrot.slane %v877_v0, 5  ;;  %s827_s0 = smov 8  }
   0x7   :  { %v54_v5 = vperm.slane %v882_v1, 0  ;;  %v55_v6 = vperm.slane %v882_v1, 3  ;;  %v57_v7 = vrot.slane %v882_v1, 5  ;;  %s828_s1 = smov 24   ;;  %s829_s2 = smov 16   ;;  %vm127_vm2 = vcmask 1043456  }
   0x8   :  { %v225_v8 = vsel %vm59_vm0, %v220_v2, %v223_v4  ;;  %v228_v9 = vpack.c.bf16 %v221_v3, %v221_v3  ;;  %s830_s12 = smov 32   ;;  %v211_v46 = vld [vmem:[#allocation2 + $0x24] sm:$0xf]  ;;  %v763_v50 = vld [vmem:[#allocation2 + $0x1c] sm:$0xff]  ;;  %v48_v51 = vld [vmem:[#allocation2 + $0x10] sm:$0xf] }
   0x9   :  { %v226_v10 = vsel %vm61_vm1, %v225_v8, %v221_v3  ;;  %v60_v11 = vsel %vm59_vm0, %v54_v5, %v57_v7  ;;  %v64_v20 = vpack.c.bf16 %v55_v6, %v55_v6  ;;  %v278_v47 = vunpack.c.l.b16 %v211_v46  ;;  %v762_v55 = vld [vmem:[#allocation2 + $0x14] sm:$0xff]  ;;  %v760_v56 = vld [vmem:[#allocation2 + $0x8] sm:$0xff]  ;;  %v759_v57 = vld [vmem:[#allocation2] sm:$0xff] }
   0xa   :  { %v893_v12 = vpack.c.bf16 %v226_v10, %v226_v10  ;;  %v245_v13 = vunpack.c.l.b16 %v228_v9  ;;  %v62_v14 = vsel %vm61_vm1, %v60_v11, %v55_v6  ;;  %v118_v52 = vunpack.c.l.b16 %v48_v51 }
   0xb   :  { %v896_v15 = vpack.c.bf16 %v62_v14, %v62_v14  ;;  %v81_v29 = vunpack.c.l.b16 %v64_v20  ;;  %v281_v48 = vpack.c.b16 %v278_v47, %v278_v47  ;;  %vm96_vm3 = vcmask 64512  }
   0xc   :  { %v230_v16 = vunpack.c.l.b16 %v893_v12  ;;  %v121_v53 = vpack.c.b16 %v118_v52, %v118_v52  ;;  %vm100_vm4 = vcmask 130048   ;;  %vm103_vm5 = vcmask 195584  }
   0xd   :  { %v66_v17 = vunpack.c.l.b16 %v896_v15  ;;  %v287_v49 = vsel %vm127_vm2, %v281_v48, 0  ;;  %vm106_vm6 = vcmask 261120   ;;  %vm124_vm7 = vcmask 326656  }
   0xe   :  { %v231_v18 = vpack.c.b16 %v230_v16, %v230_v16  ;;  %v246_v19 = vpack.c.b16 %v245_v13, %v230_v16  ;;  %294 = vmatpush.bf16.msra.mxu2 %v287_v49  ;;  %v129_v54 = vsel %vm127_vm2, %v121_v53, 0  ;;  %v779_v13 = vld [vmem:[%s1049_s3] ss:$0 sm:$0xff]  ;;  %vm520_vm8 = vcmask 60416  }
   0xf   :  { %v67_v21 = vpack.c.b16 %v66_v17, %v66_v17  ;;  %v82_v35 = vpack.c.b16 %v81_v29, %v66_v17  ;;  %136 = vmatpush.bf16.msra.mxu0 %v129_v54  ;;  %v761_v49 = vld [vmem:[%s1050_s4] sm:$0xff] }
  0x10   :  { %v233_v22 = vshrl.u32 %v231_v18, 16  ;;  %v235_v23 = vshll.u32 %v231_v18, 16  ;;  %v248_v24 = vshrl.u32 %v246_v19, 16  ;;  %v251_v25 = vshll.u32 %v246_v19, 16 }
  0x11   :  { %v69_v30 = vshrl.u32 %v67_v21, 16  ;;  %v71_v31 = vshll.u32 %v67_v21, 16  ;;  %v241_v37 = vrot.slane %v231_v18, 1  ;;  %v257_v38 = vrot.slane %v246_v19, 2 }
  0x12   :  { %v237_v26 = vrot.slane %v235_v23, 1  ;;  %v250_v27 = vrot.slane %v248_v24, 1  ;;  %v253_v28 = vrot.slane %v251_v25, 2  ;;  %v84_v39 = vshrl.u32 %v82_v35, 16  ;;  %295 = vmatpush.bf16.msra.mxu2 %v763_v50 }
  0x13   :  { %v73_v34 = vrot.slane %v71_v31, 1  ;;  %v87_v40 = vshll.u32 %v82_v35, 16  ;;  %v77_v41 = vrot.slane %v67_v21, 1  ;;  %v93_v45 = vrot.slane %v82_v35, 2  ;;  %137 = vmatpush.bf16.msra.mxu0 %v760_v56 }
  0x14   :  { %v238_v32 = vor.u32 %v237_v26, %v233_v22  ;;  %v254_v33 = vor.u32 %v253_v28, %v250_v27  ;;  %v86_v42 = vrot.slane %v84_v39, 1 }
  0x15   :  { %v74_v36 = vor.u32 %v73_v34, %v69_v30  ;;  %v89_v43 = vrot.slane %v87_v40, 2  ;;  %v705_v40 = vld [vmem:[%s1050_s4 + $0x14] sm:$0xf] }
  0x16   :  { %239 = vrot.lane.b32.xlu0 %v238_v32, %s827_s0  ;;  %255 = vrot.lane.b32.xlu1 %v254_v33, %s828_s1 }
  0x17   :  { %75 = vrot.lane.b32.xlu2 %v74_v36, %s827_s0  ;;  %v90_v44 = vor.u32 %v89_v43, %v86_v42  ;;  %296 = vmatpush.bf16.msra.mxu2 %v762_v55 }
  0x18   :  { %138 = vmatpush.bf16.msra.mxu0 %v759_v57 }
  0x1e   :  { %242 = vrot.lane.b32.xlu0 %v241_v37, %s829_s2  ;;  %258 = vrot.lane.b32.xlu1 %v257_v38, %s830_s12 }
  0x1f   :  { %78 = vrot.lane.b32.xlu2 %v77_v41, %s829_s2  ;;  %v334_v41 = vunpack.c.l.b16 %v705_v40 }
  0x21   :  { %v336_v42 = vpack.c.b16 %v334_v41, %v334_v41 }
  0x23   :  { %v341_v43 = vsel %vm127_vm2, %v336_v42, 0 }
  0x24   :  { %349 = vmatpush.bf16.msra.mxu3 %v341_v43 }
  0x26   :  { %91 = vrot.lane.b32.xlu0 %v90_v44, %s828_s1  ;;  %94 = vrot.lane.b32.xlu1 %v93_v45, %s830_s12  ;;  %v764_v44 = vld [vmem:[%s1050_s4 + $0xc] sm:$0xff]  ;;  %v52_v45 = vld [vmem:[%s1050_s4 + $0x8] sm:$0xf] }
  0x27   :  { %v176_v46 = vunpack.c.l.b16 %v52_v45 }
  0x28   :  { %350 = vmatpush.bf16.msra.mxu3 %v764_v44 }
  0x29   :  { %v178_v47 = vpack.c.b16 %v176_v46, %v176_v46 }
  0x2b   :  { %v183_v48 = vsel %vm127_vm2, %v178_v47, 0 }
  0x2c   :  { %191 = vmatpush.bf16.msra.mxu1 %v183_v48 }
  0x30   :  { %192 = vmatpush.bf16.msra.mxu1 %v761_v49 }
  0x71   :  { %v76_v60 = vpop.permute.xlu2 %75 }
  0x72   :  { %v99_v5 = vsel %vm96_vm3, %v896_v15, %v76_v60 }
  0x79   :  { %v79_v6 = vpop.permute.xlu2 %78 }
  0x7a   :  { %v102_v7 = vsel %vm100_vm4, %v99_v5, %v79_v6 }
  0x88   :  { %v240_v58 = vpop.permute.xlu0 %239  ;;  %v256_v59 = vpop.permute.xlu1 %255 }
  0x89   :  { %v262_v61 = vsel %vm96_vm3, %v893_v12, %v240_v58  ;;  %v778_v12 = vld [vmem:[%s1049_s3 + $0x1] ss:$0 sm:$0xff]  ;;  %v780_v58 = vld [vmem:[%s1051_s5] ss:$0 sm:$0xff] }
  0x90   :  { %v243_v62 = vpop.permute.xlu0 %242  ;;  %v259_v63 = vpop.permute.xlu1 %258 }
  0x91   :  { %v264_v2 = vsel %vm100_vm4, %v262_v61, %v243_v62 }
  0x92   :  { %v266_v3 = vsel %vm103_vm5, %v264_v2, %v256_v59  ;;  %v781_v59 = vld [vmem:[%s1051_s5 + $0x1] ss:$0 sm:$0xff] }
  0x93   :  { %v268_v4 = vsel %vm106_vm6, %v266_v3, %v259_v63 }
  0x94   :  { %715 = vmatmul.msk.bf16.vlgmr.msra.gmra.mxu2 %vm124_vm7, %v268_v4 }
  0x98   :  { %v92_v8 = vpop.permute.xlu0 %91  ;;  %v95_v9 = vpop.permute.xlu1 %94 }
  0x99   :  { %v105_v10 = vsel %vm103_vm5, %v102_v7, %v92_v8 }
  0x9a   :  { %v108_v11 = vsel %vm106_vm6, %v105_v10, %v95_v9 }
  0x9b   :  { %696 = vmatmul.msk.bf16.vlgmr.msra.gmra.mxu0 %vm124_vm7, %v108_v11 }
 0x117   :  { %v298_v14 = vpop.f32.mrf.mxu2 }
 0x118   :  { %v305_v15 = vadd.f32 %v778_v12, %v298_v14  ;;  %v140_v16 = vpop.f32.mrf.mxu0 }
 0x119   :  { %v147_v17 = vadd.f32 %v779_v13, %v140_v16 }
 0x11a   :  { %v306_v18 = vmul.f32 0.01, %v305_v15 }
 0x11b   :  { %v148_v19 = vmul.f32 0.01, %v147_v17 }
 0x11c   :  { %v307_v20 = vmax.f32 %v305_v15, %v306_v18 }
 0x11d   :  { %v149_v21 = vmax.f32 %v147_v17, %v148_v19 }
 0x11e   :  { %v308_v22 = vpack.c.bf16 %v307_v20, %v307_v20 }
 0x11f   :  { %v150_v23 = vpack.c.bf16 %v149_v21, %v149_v21  ;;  %v300_v24 = vpop.f32.mrf.mxu2 }
 0x120   :  { %v310_v25 = vunpack.c.l.b16 %v308_v22  ;;  %v142_v26 = vpop.f32.mrf.mxu0 }
 0x121   :  { %v152_v27 = vunpack.c.l.b16 %v150_v23 }
 0x122   :  { %v311_v28 = vpack.c.b16 %v310_v25, %v310_v25 }
 0x123   :  { %v153_v29 = vpack.c.b16 %v152_v27, %v152_v27 }
 0x124   :  { %v321_v30 = vrot.slane %v311_v28, 1  ;;  %v315_v31 = vshll.u32 %v311_v28, 16  ;;  %v313_v33 = vshrl.u32 %v311_v28, 16 }
 0x125   :  { %v157_v32 = vshll.u32 %v153_v29, 16  ;;  %v155_v35 = vshrl.u32 %v153_v29, 16  ;;  %v163_v39 = vrot.slane %v153_v29, 1 }
 0x126   :  { %322 = vrot.lane.b32.xlu0 %v321_v30, %s829_s2  ;;  %v317_v34 = vrot.slane %v315_v31, 1 }
 0x127   :  { %v159_v36 = vrot.slane %v157_v32, 1 }
 0x128   :  { %v318_v37 = vor.u32 %v317_v34, %v313_v33 }
 0x129   :  { %v160_v38 = vor.u32 %v159_v36, %v155_v35 }
 0x12a   :  { %319 = vrot.lane.b32.xlu2 %v318_v37, %s827_s0 }
 0x12b   :  { %161 = vrot.lane.b32.xlu1 %v160_v38, %s827_s0 }
 0x132   :  { %164 = vrot.lane.b32.xlu2 %v163_v39, %s829_s2 }
 0x184   :  { %v320_v50 = vpop.permute.xlu2 %319 }
 0x185   :  { %v326_v51 = vsel %vm96_vm3, %v308_v22, %v320_v50 }
 0x18c   :  { %v165_v55 = vpop.permute.xlu2 %164 }
 0x198   :  { %v323_v52 = vpop.permute.xlu0 %322 }
 0x199   :  { %v328_v53 = vsel %vm100_vm4, %v326_v51, %v323_v52 }
 0x19a   :  { %720 = vmatmul.msk.bf16.vlgmr.msra.gmra.mxu3 %vm103_vm5, %v328_v53 }
 0x19d   :  { %v162_v54 = vpop.permute.xlu1 %161 }
 0x19e   :  { %v168_v56 = vsel %vm96_vm3, %v150_v23, %v162_v54  ;;  %v527_v54 = vld [vmem:[#allocation2 + $0x4c] sm:$0xf] }
 0x19f   :  { %v170_v57 = vsel %vm100_vm4, %v168_v56, %v165_v55  ;;  %v369_v55 = vld [vmem:[#allocation2 + $0x38] sm:$0xf]  ;;  %v594_v56 = vunpack.c.l.b16 %v527_v54 }
 0x1a0   :  { %701 = vmatmul.msk.bf16.vlgmr.msra.gmra.mxu1 %vm103_vm5, %v170_v57  ;;  %v436_v57 = vunpack.c.l.b16 %v369_v55 }
 0x21d   :  { %v194_v60 = vpop.f32.mrf.mxu1  ;;  %v352_v61 = vpop.f32.mrf.mxu3 }
 0x21e   :  { %v201_v62 = vadd.f32 %v780_v58, %v194_v60  ;;  %v359_v63 = vadd.f32 %v781_v59, %v352_v61  ;;  %v597_v58 = vpack.c.b16 %v594_v56, %v594_v56  ;;  %v439_v59 = vpack.c.b16 %v436_v57, %v436_v57  ;;  %v767_v56 = vld [vmem:[%s1050_s4 + $0x18] sm:$0xff]  ;;  %v770_v57 = vld [vmem:[%s1050_s4 + $0x24] sm:$0xff] }
 0x220   :  { %786 = vtanh.f32 %v201_v62  ;;  %v603_v60 = vsel %vm127_vm2, %v597_v58, 0  ;;  %v445_v61 = vsel %vm127_vm2, %v439_v59, 0  ;;  %v769_v62 = vld [vmem:[#allocation2 + $0x44] sm:$0xff] }
 0x221   :  { %788 = vtanh.f32 %v359_v63  ;;  %610 = vmatpush.bf16.msrb.mxu0 %v603_v60  ;;  %452 = vmatpush.bf16.msrb.mxu1 %v445_v61  ;;  %v766_v63 = vld [vmem:[#allocation2 + $0x30] sm:$0xff] }
 0x225   :  { %v196_v2 = vpop.f32.mrf.mxu1  ;;  %v354_v3 = vpop.f32.mrf.mxu3  ;;  %611 = vmatpush.bf16.msrb.mxu0 %v769_v62  ;;  %453 = vmatpush.bf16.msrb.mxu1 %v766_v63 }
 0x226   :  { %v787_v4 = vpop.eup %786  ;;  %v768_v2 = vld [vmem:[#allocation2 + $0x3c] sm:$0xff]  ;;  %v765_v3 = vld [vmem:[#allocation2 + $0x28] sm:$0xff] }
 0x227   :  { %v789_v5 = vpop.eup %788  ;;  %v203_v6 = vmul.f32 1.442695, %v787_v4 }
 0x228   :  { %v361_v7 = vmul.f32 1.442695, %v789_v5 }
 0x229   :  { %790 = vpow2.f32 %v203_v6  ;;  %612 = vmatpush.bf16.msrb.mxu0 %v768_v2  ;;  %454 = vmatpush.bf16.msrb.mxu1 %v765_v3 }
 0x22a   :  { %792 = vpow2.f32 %v361_v7 }
 0x22f   :  { %v791_v8 = vpop.eup %790 }
 0x230   :  { %v793_v9 = vpop.eup %792  ;;  %v959_v10 = vmul.f32 %v791_v8, %v877_v0 }
 0x231   :  { %v962_v11 = vmul.f32 %v793_v9, %v882_v1 }
 0x232   :  { %v378_v12 = vperm.slane %v959_v10, 0  ;;  %v381_v13 = vrot.slane %v959_v10, 5  ;;  %v379_v14 = vperm.slane %v959_v10, 3 }
 0x233   :  { %v536_v15 = vperm.slane %v962_v11, 0  ;;  %v539_v16 = vrot.slane %v962_v11, 5  ;;  %v537_v17 = vperm.slane %v962_v11, 3 }
 0x234   :  { %v383_v18 = vsel %vm59_vm0, %v378_v12, %v381_v13  ;;  %v386_v19 = vpack.c.bf16 %v379_v14, %v379_v14 }
 0x235   :  { %v384_v0 = vsel %vm61_vm1, %v383_v18, %v379_v14  ;;  %v541_v1 = vsel %vm59_vm0, %v536_v15, %v539_v16  ;;  %v544_v20 = vpack.c.bf16 %v537_v17, %v537_v17 }
 0x236   :  { %v973_v21 = vpack.c.bf16 %v384_v0, %v384_v0  ;;  %v542_v22 = vsel %vm61_vm1, %v541_v1, %v537_v17  ;;  %v403_v25 = vunpack.c.l.b16 %v386_v19 }
 0x237   :  { %v976_v23 = vpack.c.bf16 %v542_v22, %v542_v22  ;;  %v561_v27 = vunpack.c.l.b16 %v544_v20  ;;  %v783_v20 = vld [vmem:[%s1049_s3 + $0x3] ss:$0 sm:$0xff] }
 0x238   :  { %v388_v24 = vunpack.c.l.b16 %v973_v21 }
 0x239   :  { %v546_v26 = vunpack.c.l.b16 %v976_v23 }
 0x23a   :  { %v389_v28 = vpack.c.b16 %v388_v24, %v388_v24  ;;  %v404_v29 = vpack.c.b16 %v403_v25, %v388_v24 }
 0x23b   :  { %v562_v30 = vpack.c.b16 %v561_v27, %v546_v26  ;;  %v547_v34 = vpack.c.b16 %v546_v26, %v546_v26 }
 0x23c   :  { %v399_v31 = vrot.slane %v389_v28, 1  ;;  %v406_v32 = vshrl.u32 %v404_v29, 16  ;;  %v409_v33 = vshll.u32 %v404_v29, 16  ;;  %v393_v35 = vshll.u32 %v389_v28, 16 }
 0x23d   :  { %v564_v36 = vshrl.u32 %v562_v30, 16  ;;  %v567_v37 = vshll.u32 %v562_v30, 16  ;;  %v391_v40 = vshrl.u32 %v389_v28, 16  ;;  %v551_v45 = vshll.u32 %v547_v34, 16 }
 0x23e   :  { %400 = vrot.lane.b32.xlu2 %v399_v31, %s829_s2  ;;  %v408_v38 = vrot.slane %v406_v32, 1  ;;  %v411_v39 = vrot.slane %v409_v33, 2  ;;  %v395_v41 = vrot.slane %v393_v35, 1  ;;  %v549_v49 = vshrl.u32 %v547_v34, 16 }
 0x23f   :  { %v566_v43 = vrot.slane %v564_v36, 1  ;;  %v569_v44 = vrot.slane %v567_v37, 2  ;;  %v553_v48 = vrot.slane %v551_v45, 1  ;;  %v557_v51 = vrot.slane %v547_v34, 1 }
 0x240   :  { %v412_v42 = vor.u32 %v411_v39, %v408_v38  ;;  %v396_v46 = vor.u32 %v395_v41, %v391_v40  ;;  %v573_v52 = vrot.slane %v562_v30, 2  ;;  %v415_v53 = vrot.slane %v404_v29, 2 }
 0x241   :  { %v570_v47 = vor.u32 %v569_v44, %v566_v43  ;;  %v554_v50 = vor.u32 %v553_v48, %v549_v49  ;;  %v724_v48 = vld [vmem:[%s1050_s4 + $0x20] sm:$0xf]  ;;  %v743_v49 = vld [vmem:[%s1050_s4 + $0x2c] sm:$0xf] }
 0x242   :  { %413 = vrot.lane.b32.xlu1 %v412_v42, %s828_s1  ;;  %397 = vrot.lane.b32.xlu0 %v396_v46, %s827_s0 }
 0x246   :  { %571 = vrot.lane.b32.xlu2 %v570_v47, %s828_s1 }
 0x24a   :  { %555 = vrot.lane.b32.xlu1 %v554_v50, %s827_s0  ;;  %558 = vrot.lane.b32.xlu0 %v557_v51, %s829_s2  ;;  %v492_v50 = vunpack.c.l.b16 %v724_v48  ;;  %v650_v51 = vunpack.c.l.b16 %v743_v49 }
 0x252   :  { %574 = vrot.lane.b32.xlu1 %v573_v52, %s830_s12  ;;  %416 = vrot.lane.b32.xlu0 %v415_v53, %s830_s12  ;;  %v494_v52 = vpack.c.b16 %v492_v50, %v492_v50  ;;  %v652_v53 = vpack.c.b16 %v650_v51, %v650_v51 }
 0x254   :  { %v499_v54 = vsel %vm127_vm2, %v494_v52, 0  ;;  %v657_v55 = vsel %vm127_vm2, %v652_v53, 0 }
 0x255   :  { %507 = vmatpush.bf16.msrb.mxu3 %v499_v54  ;;  %665 = vmatpush.bf16.msrb.mxu2 %v657_v55 }
 0x259   :  { %508 = vmatpush.bf16.msrb.mxu3 %v767_v56  ;;  %666 = vmatpush.bf16.msrb.mxu2 %v770_v57 }
 0x298   :  { %v401_v6 = vpop.permute.xlu2 %400 }
 0x2a0   :  { %v572_v15 = vpop.permute.xlu2 %571 }
 0x2b4   :  { %v414_v4 = vpop.permute.xlu1 %413  ;;  %v398_v5 = vpop.permute.xlu0 %397 }
 0x2b5   :  { %v420_v12 = vsel %vm96_vm3, %v973_v21, %v398_v5  ;;  %v782_v21 = vld [vmem:[%s1049_s3 + $0x2] ss:$0 sm:$0xff] }
 0x2b6   :  { %v422_v14 = vsel %vm100_vm4, %v420_v12, %v401_v6 }
 0x2b7   :  { %v424_v19 = vsel %vm103_vm5, %v422_v14, %v414_v4  ;;  %v784_v4 = vld [vmem:[%s1051_s5 + $0x2] ss:$0 sm:$0xff] }
 0x2bc   :  { %v556_v7 = vpop.permute.xlu1 %555  ;;  %v559_v8 = vpop.permute.xlu0 %558 }
 0x2bd   :  { %v578_v9 = vsel %vm96_vm3, %v976_v23, %v556_v7  ;;  %v785_v7 = vld [vmem:[%s1051_s5 + $0x3] ss:$0 sm:$0xff] }
 0x2be   :  { %v580_v13 = vsel %vm100_vm4, %v578_v9, %v559_v8 }
 0x2bf   :  { %v582_v17 = vsel %vm103_vm5, %v580_v13, %v572_v15 }
 0x2c4   :  { %v575_v16 = vpop.permute.xlu1 %574  ;;  %v417_v0 = vpop.permute.xlu0 %416 }
 0x2c5   :  { %v584_v18 = vsel %vm106_vm6, %v582_v17, %v575_v16  ;;  %v426_v1 = vsel %vm106_vm6, %v424_v19, %v417_v0 }
 0x2c6   :  { %753 = vmatmul.msk.bf16.vlgmr.msrb.gmra.mxu0 %vm124_vm7, %v584_v18  ;;  %734 = vmatmul.msk.bf16.vlgmr.msrb.gmra.mxu1 %vm124_vm7, %v426_v1 }
 0x343   :  { %v614_v22 = vpop.f32.mrf.mxu0  ;;  %v456_v23 = vpop.f32.mrf.mxu1 }
 0x344   :  { %v621_v24 = vadd.f32 %v783_v20, %v614_v22  ;;  %v463_v25 = vadd.f32 %v782_v21, %v456_v23 }
 0x346   :  { %v622_v26 = vmul.f32 0.01, %v621_v24  ;;  %v464_v27 = vmul.f32 0.01, %v463_v25 }
 0x348   :  { %v623_v28 = vmax.f32 %v621_v24, %v622_v26  ;;  %v465_v29 = vmax.f32 %v463_v25, %v464_v27 }
 0x34a   :  { %v624_v30 = vpack.c.bf16 %v623_v28, %v623_v28  ;;  %v466_v31 = vpack.c.bf16 %v465_v29, %v465_v29 }
 0x34b   :  { %v616_v32 = vpop.f32.mrf.mxu0  ;;  %v458_v34 = vpop.f32.mrf.mxu1 }
 0x34c   :  { %v626_v33 = vunpack.c.l.b16 %v624_v30  ;;  %v468_v35 = vunpack.c.l.b16 %v466_v31 }
 0x34e   :  { %v627_v36 = vpack.c.b16 %v626_v33, %v626_v33  ;;  %v469_v37 = vpack.c.b16 %v468_v35, %v468_v35 }
 0x350   :  { %v631_v38 = vshll.u32 %v627_v36, 16  ;;  %v479_v39 = vrot.slane %v469_v37, 1  ;;  %v473_v40 = vshll.u32 %v469_v37, 16  ;;  %v629_v41 = vshrl.u32 %v627_v36, 16 }
 0x351   :  { %v471_v43 = vshrl.u32 %v469_v37, 16  ;;  %v637_v47 = vrot.slane %v627_v36, 1 }
 0x352   :  { %v633_v42 = vrot.slane %v631_v38, 1  ;;  %480 = vrot.lane.b32.xlu1 %v479_v39, %s829_s2  ;;  %v475_v44 = vrot.slane %v473_v40, 1 }
 0x354   :  { %v634_v45 = vor.u32 %v633_v42, %v629_v41  ;;  %v476_v46 = vor.u32 %v475_v44, %v471_v43 }
 0x356   :  { %635 = vrot.lane.b32.xlu0 %v634_v45, %s827_s0  ;;  %477 = vrot.lane.b32.xlu2 %v476_v46, %s827_s0 }
 0x35e   :  { %638 = vrot.lane.b32.xlu2 %v637_v47, %s829_s2 }
 0x3b0   :  { %v478_v58 = vpop.permute.xlu2 %477 }
 0x3b1   :  { %v484_v59 = vsel %vm96_vm3, %v466_v31, %v478_v58 }
 0x3b8   :  { %v639_v63 = vpop.permute.xlu2 %638 }
 0x3c4   :  { %v481_v60 = vpop.permute.xlu1 %480 }
 0x3c5   :  { %v486_v61 = vsel %vm100_vm4, %v484_v59, %v481_v60 }
 0x3c6   :  { %739 = vmatmul.msk.bf16.vlgmr.msrb.gmra.mxu3 %vm103_vm5, %v486_v61 }
 0x3c8   :  { %v636_v62 = vpop.permute.xlu0 %635 }
 0x3c9   :  { %v642_v2 = vsel %vm96_vm3, %v624_v30, %v636_v62 }
 0x3ca   :  { %v644_v3 = vsel %vm100_vm4, %v642_v2, %v639_v63 }
 0x3cb   :  { %758 = vmatmul.msk.bf16.vlgmr.msrb.gmra.mxu2 %vm103_vm5, %v644_v3 }
 0x449   :  { %v510_v5 = vpop.f32.mrf.mxu3 }
 0x44a   :  { %v517_v6 = vadd.f32 %v784_v4, %v510_v5 }
 0x44c   :  { %794 = vtanh.f32 %v517_v6 }
 0x44e   :  { %v668_v8 = vpop.f32.mrf.mxu2 }
 0x44f   :  { %v675_v9 = vadd.f32 %v785_v7, %v668_v8 }
 0x451   :  { %796 = vtanh.f32 %v675_v9  ;;  %v512_v12 = vpop.f32.mrf.mxu3 }
 0x452   :  { %v795_v13 = vpop.eup %794 }
 0x453   :  { %v519_v14 = vadd.f32 %v795_v13, %v962_v11 }
 0x455   :  { %521 = vst.msk [vmem:[%s1052_s6] sm:$0xf] %vm520_vm8, %v519_v14 }
 0x456   :  { %v670_v15 = vpop.f32.mrf.mxu2 }
 0x457   :  { %v797_v16 = vpop.eup %796 }
 0x458   :  { %v677_v17 = vsub.f32 %v959_v10, %v797_v16 }
 0x45a   :  { %678 = vst.msk [vmem:[%s1053_s7] sm:$0xf] %vm520_vm8, %v677_v17 }
 0x45b   :  { %687 = vsyncpa [#allocation3], 1 }

</bundles_post_ra>
